<compile_context>
chip_gen: v5e
topology: v5e:2x2
jax: 0.10.0
libtpu: 0.0.40
codegen_flags: <defaults>
</compile_context>

<pallas_src>
import functools

import jax
import jax.numpy as jnp
from jax.experimental import pallas as pl
from jax.experimental.pallas import tpu as pltpu


# ---------------------------------------------------------------------------
# Pallas kernel: fused  im2col-matmul -> ReLU -> 1x1 -> ReLU -> 1x1 -> ReLU -> 1x1
# ---------------------------------------------------------------------------
def _encoder_kernel(patches_ref,
                    w0_ref, b0_ref,
                    w1_ref, b1_ref,
                    w2_ref, b2_ref,
                    wf_ref, bf_ref,
                    out_ref):
    x = patches_ref[...]                                         # (TM, K) bf16

    # windowed strided conv == patches @ W0, fused bias + ReLU (f32 accumulate)
    h = jnp.maximum(
        jnp.dot(x, w0_ref[...], preferred_element_type=jnp.float32) + b0_ref[...],
        0.0)

    # rewrite layer 1 (1x1 conv + ReLU) — feed the MXU bf16 operands
    h = jnp.maximum(
        jnp.dot(h.astype(jnp.bfloat16), w1_ref[...],
                preferred_element_type=jnp.float32) + b1_ref[...],
        0.0)

    # rewrite layer 2 (1x1 conv + ReLU)
    h = jnp.maximum(
        jnp.dot(h.astype(jnp.bfloat16), w2_ref[...],
                preferred_element_type=jnp.float32) + b2_ref[...],
        0.0)

    # final 1x1 conv to the embedding dimension (no activation)
    y = jnp.dot(h.astype(jnp.bfloat16), wf_ref[...],
                preferred_element_type=jnp.float32) + bf_ref[...]
    out_ref[...] = y.astype(out_ref.dtype)


def _encoder_pallas(patches, params, *, tile_rows):
    """patches: (N, K) bf16 im2col matrix.  params: (in,out) bf16 weights + f32 biases."""
    N, K = patches.shape
    C = params["w0"].shape[1]
    D = params["wf"].shape[1]

    # Pad the row count up to a tile multiple (no divisibility assert): pad rows
    # are garbage-in/garbage-out and get sliced off below.
    num_tiles = pl.cdiv(N, tile_rows)
    n_pad = num_tiles * tile_rows
    if n_pad != N:
        patches = jnp.pad(patches, ((0, n_pad - N), (0, 0)))

    def row_spec(cols):
        return pl.BlockSpec((tile_rows, cols), lambda i: (i, 0))

    def resident_spec(shape):
        # Constant index_map: fetched once, resident for the whole grid.
        # Single-buffer it so it does not reserve 2x its VMEM footprint.
        return pl.BlockSpec(shape, lambda i: (0, 0),
                            pipeline_mode=pl.Buffered(buffer_count=1))

    # TODO(synk): at production scale (C=4096) the two (C, C) rewrite weights are
    # ~32 MiB each even in bf16; on v7x (64 MiB VMEM) they must be streamed from
    # HBM (memory_space=pl.ANY + pltpu.emit_pipeline over output-channel blocks)
    # instead of kept fully resident as done here.
    out = pl.pallas_call(
        _encoder_kernel,
        out_shape=jax.ShapeDtypeStruct((n_pad, D), jnp.float32),
        grid_spec=pltpu.PrefetchScalarGridSpec(
            num_scalar_prefetch=0,
            grid=(num_tiles,),
            in_specs=[
                row_spec(K),                                     # patches (row tiled)
                resident_spec((K, C)), resident_spec((1, C)),    # windowed first conv
                resident_spec((C, C)), resident_spec((1, C)),    # rewrite 1
                resident_spec((C, C)), resident_spec((1, C)),    # rewrite 2
                resident_spec((C, D)), resident_spec((1, D)),    # final projection
            ],
            out_specs=row_spec(D),
        ),
        compiler_params=pltpu.CompilerParams(
            dimension_semantics=("parallel",),       # row tiles shard across TCs
            vmem_limit_bytes=64 * 1024 * 1024,       # resident weights + big tiles
        ),
    )(patches,
      params["w0"], params["b0"],
      params["w1"], params["b1"],
      params["w2"], params["b2"],
      params["wf"], params["bf"])

    return out[:N]


# ---------------------------------------------------------------------------
# Wrapper: parameter prep (windowing), im2col glue, layout conversion
# ---------------------------------------------------------------------------
def make_params(key, channels, dimension, kernel_size):
    """Deterministic synthetic parameters matching the module's shapes."""
    ks = jax.random.split(key, 8)
    scale = 0.05

    # PyTorch shapes: conv0.weight (C, 1, K); 1x1 convs (C, C, 1); final (D, C, 1)
    w0 = scale * jax.random.normal(ks[0], (channels, 1, kernel_size), jnp.float32)
    b0 = scale * jax.random.normal(ks[1], (channels,), jnp.float32)
    w1 = scale * jax.random.normal(ks[2], (channels, channels, 1), jnp.float32)
    b1 = scale * jax.random.normal(ks[3], (channels,), jnp.float32)
    w2 = scale * jax.random.normal(ks[4], (channels, channels, 1), jnp.float32)
    b2 = scale * jax.random.normal(ks[5], (channels,), jnp.float32)
    wf = scale * jax.random.normal(ks[6], (dimension, channels, 1), jnp.float32)
    bf = scale * jax.random.normal(ks[7], (dimension,), jnp.float32)

    # WindowedConv1d: multiply first conv weight by hann(K)^2 along the taps.
    # torch.hann_window(K) (periodic): 0.5 * (1 - cos(2*pi*n / K)); squared_window=True.
    n = jnp.arange(kernel_size, dtype=jnp.float32)
    win = 0.5 * (1.0 - jnp.cos(2.0 * jnp.pi * n / kernel_size))
    win = win * win
    w0 = w0 * win[None, None, :]

    # Pre-transpose everything to (in, out) matmul layout; weights in bf16 for
    # 2x MXU rate and half the VMEM/HBM traffic, biases stay f32.
    return {
        "w0": jnp.transpose(w0[:, 0, :], (1, 0)).astype(jnp.bfloat16),   # (K, C)
        "b0": b0[None, :],                                               # (1, C) f32
        "w1": jnp.transpose(w1[:, :, 0], (1, 0)).astype(jnp.bfloat16),   # (C, C)
        "b1": b1[None, :],
        "w2": jnp.transpose(w2[:, :, 0], (1, 0)).astype(jnp.bfloat16),   # (C, C)
        "b2": b2[None, :],
        "wf": jnp.transpose(wf[:, :, 0], (1, 0)).astype(jnp.bfloat16),   # (C, D)
        "bf": bf[None, :],
    }


def im2col(signal, kernel_size, stride):
    """signal (B, 1, T) -> patches (B*L, K), single vectorized gather (no Python loop)."""
    B, _, T = signal.shape
    L = (T - kernel_size) // stride + 1
    x = signal[:, 0, :]                                               # (B, T)
    idx = jnp.arange(L)[:, None] * stride + jnp.arange(kernel_size)[None, :]
    patches = jnp.take(x, idx, axis=1)                                # (B, L, K)
    # TODO(synk): at production (K = 4*stride) fold the im2col into the kernel as
    # K//stride shifted block matmuls on a (B, T//stride, stride) frame view to
    # avoid materializing the 4x-duplicated patch matrix in HBM.
    return patches.reshape(B * L, kernel_size), L


@functools.partial(jax.jit, static_argnames=("kernel_size", "stride", "tile_rows"))
def convolutional_encoder(signal, params, *, kernel_size, stride, tile_rows=256):
    B = signal.shape[0]
    patches, L = im2col(signal, kernel_size, stride)                  # (B*L, K) f32
    patches = patches.astype(jnp.bfloat16)
    out = _encoder_pallas(patches, params, tile_rows=tile_rows)       # (B*L, D) f32
    D = out.shape[-1]
    # back to PyTorch NCL layout: (B, D, L)
    return jnp.transpose(out.reshape(B, L, D), (0, 2, 1))


def reference_encoder(signal, params, *, kernel_size, stride):
    """Pure-JAX reference with identical (bf16-in / f32-accumulate) math."""
    patches, L = im2col(signal, kernel_size, stride)
    x = patches.astype(jnp.bfloat16)
    h = jnp.maximum(jnp.dot(x, params["w0"],
                            preferred_element_type=jnp.float32) + params["b0"], 0.0)
    h = jnp.maximum(jnp.dot(h.astype(jnp.bfloat16), params["w1"],
                            preferred_element_type=jnp.float32) + params["b1"], 0.0)
    h = jnp.maximum(jnp.dot(h.astype(jnp.bfloat16), params["w2"],
                            preferred_element_type=jnp.float32) + params["b2"], 0.0)
    y = jnp.dot(h.astype(jnp.bfloat16), params["wf"],
                preferred_element_type=jnp.float32) + params["bf"]
    B = signal.shape[0]
    return jnp.transpose(y.reshape(B, L, y.shape[-1]), (0, 2, 1))


if __name__ == "__main__":
    # Small but lane-dense shapes consistent with the module (real module:
    # channels=4096, stride=256, dimension=128, kernel_size=1024).  Same
    # K = 4*stride ratio; D=128 keeps the output store lane-dense; L is chosen
    # so B*L is NOT a tile multiple, exercising the cdiv/padding path, and the
    # grid has >= 2 steps so the parallel axis can shard across TensorCores.
    B = 2
    channels = 256
    stride = 32
    dimension = 128
    kernel_size = 128
    L = 129
    T = kernel_size + stride * (L - 1)                          # 4224

    key = jax.random.PRNGKey(0)
    k_sig, k_par = jax.random.split(key)
    signal = jax.random.normal(k_sig, (B, 1, T), jnp.float32)   # PyTorch NCL input
    params = make_params(k_par, channels, dimension, kernel_size)

    out = convolutional_encoder(signal, params,
                                kernel_size=kernel_size, stride=stride)
    out = jax.block_until_ready(out)

    ref = reference_encoder(signal, params,
                            kernel_size=kernel_size, stride=stride)
    assert out.shape == (B, dimension, L), out.shape
    assert jnp.allclose(out, ref, atol=1e-2, rtol=1e-2), \
        float(jnp.max(jnp.abs(out - ref)))

    print("KERNEL_OK")
</pallas_src>

<mosaic_0001>
module attributes {stable_mosaic.version = 11 : i64} {
  func.func @_encoder_kernel(%arg0: i32, %arg1: memref<256x128xbf16, #tpu.memory_space<vmem>>, %arg2: memref<128x256xbf16, #tpu.memory_space<vmem>>, %arg3: memref<1x256xf32, #tpu.memory_space<vmem>>, %arg4: memref<256x256xbf16, #tpu.memory_space<vmem>>, %arg5: memref<1x256xf32, #tpu.memory_space<vmem>>, %arg6: memref<256x256xbf16, #tpu.memory_space<vmem>>, %arg7: memref<1x256xf32, #tpu.memory_space<vmem>>, %arg8: memref<256x128xbf16, #tpu.memory_space<vmem>>, %arg9: memref<1x128xf32, #tpu.memory_space<vmem>>, %arg10: memref<256x128xf32, #tpu.memory_space<vmem>>) attributes {dimension_semantics = [#tpu.dimension_semantics<parallel>], iteration_bounds = array<i64: 2>, scalar_prefetch = 0 : i64, scratch_operands = 0 : i64, tpu.core_type = #tpu.core_type<tc>, window_params = [{transform_indices = @transform_0, window_bounds = array<i64: 256, 128>}, {pipeline_mode = #tpu.pipeline_mode<synchronous>, transform_indices = @transform_1, window_bounds = array<i64: 128, 256>}, {pipeline_mode = #tpu.pipeline_mode<synchronous>, transform_indices = @transform_2, window_bounds = array<i64: 1, 256>}, {pipeline_mode = #tpu.pipeline_mode<synchronous>, transform_indices = @transform_3, window_bounds = array<i64: 256, 256>}, {pipeline_mode = #tpu.pipeline_mode<synchronous>, transform_indices = @transform_4, window_bounds = array<i64: 1, 256>}, {pipeline_mode = #tpu.pipeline_mode<synchronous>, transform_indices = @transform_5, window_bounds = array<i64: 256, 256>}, {pipeline_mode = #tpu.pipeline_mode<synchronous>, transform_indices = @transform_6, window_bounds = array<i64: 1, 256>}, {pipeline_mode = #tpu.pipeline_mode<synchronous>, transform_indices = @transform_7, window_bounds = array<i64: 256, 128>}, {pipeline_mode = #tpu.pipeline_mode<synchronous>, transform_indices = @transform_8, window_bounds = array<i64: 1, 128>}, {transform_indices = @transform_9, window_bounds = array<i64: 256, 128>}]} {
    %c0 = arith.constant 0 : index
    %c0_0 = arith.constant 0 : index
    %0 = vector.load %arg1[%c0, %c0_0] : memref<256x128xbf16, #tpu.memory_space<vmem>>, vector<256x128xbf16>
    %c0_1 = arith.constant 0 : index
    %c0_2 = arith.constant 0 : index
    %1 = vector.load %arg2[%c0_1, %c0_2] : memref<128x256xbf16, #tpu.memory_space<vmem>>, vector<128x256xbf16>
    %cst = arith.constant dense<0.000000e+00> : vector<256x256xf32>
    %2 = tpu.matmul %0, %1, %cst {dimension_numbers = #tpu.dot_dimension_numbers<[1], [0], [0], [1], [0, 0, 1, 1], [], []>} : vector<256x128xbf16>, vector<128x256xbf16>, vector<256x256xf32> -> vector<256x256xf32>
    %c0_3 = arith.constant 0 : index
    %c0_4 = arith.constant 0 : index
    %3 = vector.load %arg3[%c0_3, %c0_4] : memref<1x256xf32, #tpu.memory_space<vmem>>, vector<1x256xf32>
    %4 = vector.broadcast %3 : vector<1x256xf32> to vector<256x256xf32>
    %5 = arith.addf %2, %4 : vector<256x256xf32>
    %cst_5 = arith.constant 0.000000e+00 : f32
    %6 = vector.broadcast %cst_5 : f32 to vector<256x256xf32>
    %7 = arith.maximumf %5, %6 : vector<256x256xf32>
    %8 = arith.truncf %7 : vector<256x256xf32> to vector<256x256xbf16>
    %c0_6 = arith.constant 0 : index
    %c0_7 = arith.constant 0 : index
    %9 = vector.load %arg4[%c0_6, %c0_7] : memref<256x256xbf16, #tpu.memory_space<vmem>>, vector<256x256xbf16>
    %cst_8 = arith.constant dense<0.000000e+00> : vector<256x256xf32>
    %10 = tpu.matmul %8, %9, %cst_8 {dimension_numbers = #tpu.dot_dimension_numbers<[1], [0], [0], [1], [0, 0, 1, 1], [], []>} : vector<256x256xbf16>, vector<256x256xbf16>, vector<256x256xf32> -> vector<256x256xf32>
    %c0_9 = arith.constant 0 : index
    %c0_10 = arith.constant 0 : index
    %11 = vector.load %arg5[%c0_9, %c0_10] : memref<1x256xf32, #tpu.memory_space<vmem>>, vector<1x256xf32>
    %12 = vector.broadcast %11 : vector<1x256xf32> to vector<256x256xf32>
    %13 = arith.addf %10, %12 : vector<256x256xf32>
    %cst_11 = arith.constant 0.000000e+00 : f32
    %14 = vector.broadcast %cst_11 : f32 to vector<256x256xf32>
    %15 = arith.maximumf %13, %14 : vector<256x256xf32>
    %16 = arith.truncf %15 : vector<256x256xf32> to vector<256x256xbf16>
    %c0_12 = arith.constant 0 : index
    %c0_13 = arith.constant 0 : index
    %17 = vector.load %arg6[%c0_12, %c0_13] : memref<256x256xbf16, #tpu.memory_space<vmem>>, vector<256x256xbf16>
    %cst_14 = arith.constant dense<0.000000e+00> : vector<256x256xf32>
    %18 = tpu.matmul %16, %17, %cst_14 {dimension_numbers = #tpu.dot_dimension_numbers<[1], [0], [0], [1], [0, 0, 1, 1], [], []>} : vector<256x256xbf16>, vector<256x256xbf16>, vector<256x256xf32> -> vector<256x256xf32>
    %c0_15 = arith.constant 0 : index
    %c0_16 = arith.constant 0 : index
    %19 = vector.load %arg7[%c0_15, %c0_16] : memref<1x256xf32, #tpu.memory_space<vmem>>, vector<1x256xf32>
    %20 = vector.broadcast %19 : vector<1x256xf32> to vector<256x256xf32>
    %21 = arith.addf %18, %20 : vector<256x256xf32>
    %cst_17 = arith.constant 0.000000e+00 : f32
    %22 = vector.broadcast %cst_17 : f32 to vector<256x256xf32>
    %23 = arith.maximumf %21, %22 : vector<256x256xf32>
    %24 = arith.truncf %23 : vector<256x256xf32> to vector<256x256xbf16>
    %c0_18 = arith.constant 0 : index
    %c0_19 = arith.constant 0 : index
    %25 = vector.load %arg8[%c0_18, %c0_19] : memref<256x128xbf16, #tpu.memory_space<vmem>>, vector<256x128xbf16>
    %cst_20 = arith.constant dense<0.000000e+00> : vector<256x128xf32>
    %26 = tpu.matmul %24, %25, %cst_20 {dimension_numbers = #tpu.dot_dimension_numbers<[1], [0], [0], [1], [0, 0, 1, 1], [], []>} : vector<256x256xbf16>, vector<256x128xbf16>, vector<256x128xf32> -> vector<256x128xf32>
    %c0_21 = arith.constant 0 : index
    %c0_22 = arith.constant 0 : index
    %27 = vector.load %arg9[%c0_21, %c0_22] : memref<1x128xf32, #tpu.memory_space<vmem>>, vector<1x128xf32>
    %28 = vector.broadcast %27 : vector<1x128xf32> to vector<256x128xf32>
    %29 = arith.addf %26, %28 : vector<256x128xf32>
    %c0_23 = arith.constant 0 : index
    %c0_24 = arith.constant 0 : index
    %30 = vector.load %arg10[%c0_23, %c0_24] : memref<256x128xf32, #tpu.memory_space<vmem>>, vector<256x128xf32>
    tpu.vector_store %arg10[%c0_23, %c0_24], %29 {strides = array<i32>} : memref<256x128xf32, #tpu.memory_space<vmem>>, vector<256x128xf32>,
    return
  }
  func.func @transform_0(%arg0: i32) -> (i32, i32) {
    %c0_i32 = arith.constant 0 : i32
    %c0_i32_0 = arith.constant 0 : i32
    return %arg0, %c0_i32 : i32, i32
  }
  func.func @transform_1(%arg0: i32) -> (i32, i32) {
    %c0_i32 = arith.constant 0 : i32
    %c0_i32_0 = arith.constant 0 : i32
    %c0_i32_1 = arith.constant 0 : i32
    return %c0_i32, %c0_i32_0 : i32, i32
  }
  func.func @transform_2(%arg0: i32) -> (i32, i32) {
    %c0_i32 = arith.constant 0 : i32
    %c0_i32_0 = arith.constant 0 : i32
    %c0_i32_1 = arith.constant 0 : i32
    return %c0_i32, %c0_i32_0 : i32, i32
  }
  func.func @transform_3(%arg0: i32) -> (i32, i32) {
    %c0_i32 = arith.constant 0 : i32
    %c0_i32_0 = arith.constant 0 : i32
    %c0_i32_1 = arith.constant 0 : i32
    return %c0_i32, %c0_i32_0 : i32, i32
  }
  func.func @transform_4(%arg0: i32) -> (i32, i32) {
    %c0_i32 = arith.constant 0 : i32
    %c0_i32_0 = arith.constant 0 : i32
    %c0_i32_1 = arith.constant 0 : i32
    return %c0_i32, %c0_i32_0 : i32, i32
  }
  func.func @transform_5(%arg0: i32) -> (i32, i32) {
    %c0_i32 = arith.constant 0 : i32
    %c0_i32_0 = arith.constant 0 : i32
    %c0_i32_1 = arith.constant 0 : i32
    return %c0_i32, %c0_i32_0 : i32, i32
  }
  func.func @transform_6(%arg0: i32) -> (i32, i32) {
    %c0_i32 = arith.constant 0 : i32
    %c0_i32_0 = arith.constant 0 : i32
    %c0_i32_1 = arith.constant 0 : i32
    return %c0_i32, %c0_i32_0 : i32, i32
  }
  func.func @transform_7(%arg0: i32) -> (i32, i32) {
    %c0_i32 = arith.constant 0 : i32
    %c0_i32_0 = arith.constant 0 : i32
    %c0_i32_1 = arith.constant 0 : i32
    return %c0_i32, %c0_i32_0 : i32, i32
  }
  func.func @transform_8(%arg0: i32) -> (i32, i32) {
    %c0_i32 = arith.constant 0 : i32
    %c0_i32_0 = arith.constant 0 : i32
    %c0_i32_1 = arith.constant 0 : i32
    return %c0_i32, %c0_i32_0 : i32, i32
  }
  func.func @transform_9(%arg0: i32) -> (i32, i32) {
    %c0_i32 = arith.constant 0 : i32
    %c0_i32_0 = arith.constant 0 : i32
    return %arg0, %c0_i32 : i32, i32
  }
}

</mosaic_0001>

<bundles_post_ra>
// kernel: convolutional_encoder.1
= control target key start
LH: loop header
LB: loop body
LE: loop exit
PB: predicated region body
PF: predicated region fallthrough
CT: control target
= control target key end

     0   :  { %s3176_s30 = smov 0   ;;  %s4341_s0 = inlined_call_operand.vmem [shape: bf16[512,128], index: 0, kind: input, shape index: {}]   ;;  %s4342_s1 = inlined_call_operand.vmem [shape: bf16[128,256], index: 1, kind: input, shape index: {}]   ;;  %s4343_s2 = inlined_call_operand.vmem [shape: f32[1,256], index: 2, kind: input, shape index: {}]   ;;  %s4344_s3 = inlined_call_operand.vmem [shape: bf16[256,256], index: 3, kind: input, shape index: {}]   ;;  %s4345_s4 = inlined_call_operand.vmem [shape: f32[1,256], index: 4, kind: input, shape index: {}]   ;;  %s4346_s5 = inlined_call_operand.vmem [shape: bf16[256,256], index: 5, kind: input, shape index: {}]   ;;  %s4347_s6 = inlined_call_operand.vmem [shape: f32[1,256], index: 6, kind: input, shape index: {}]   ;;  %s4348_s7 = inlined_call_operand.vmem [shape: bf16[256,128], index: 7, kind: input, shape index: {}]   ;;  %s4349_s8 = inlined_call_operand.vmem [shape: f32[1,128], index: 8, kind: input, shape index: {}]   ;;  %s4350_s9 = inlined_call_operand.vmem [shape: f32[512,128], index: 9, kind: output, shape index: {}]  }
   0x1 LB: > { %s2538_s10 = sadd.s32 4294967295, %s3124_s30   ;;  %p2542_p0 = scmp.ge.s32.totalorder %s3124_s30, 1  ;;  %s3124_s30 = sphi %s3176_s30, %s19_s30  }
   0x2   : > { %p288_p1 = scmp.lt.s32.totalorder %s3124_s30, 3 }
   0x4   : > { %p289_p2 = pnand %p2542_p0, %p288_p1 }
   0x5   : > { %s2543_s13 = sshll.u32 (!%p289_p2), %s2538_s10, 5 }
   0x6   : > { %292 = sbr.rel (%p289_p2) target bundleno = 1082 (0x43a), region = 56  ;;  %p325_p3 = scmp.lt.s32.totalorder (!%p289_p2), %s2543_s13, 63 }
   0xb   : > { %v2669_v0 = vld [vmem:[%s4342_s1 + $0x70] sm:$0xf]  ;;  %v3028_v1 = vld [vmem:[%s4342_s1 + $0x74] sm:$0xf0]  ;;  %v3027_v2 = vld [vmem:[%s4342_s1 + $0x74] sm:$0xf] }
   0xc   : > { %v2670_v3 = vor.u32 %v3028_v1, %v2669_v0  ;;  %v2671_v4 = vld [vmem:[%s4342_s1 + $0x78] sm:$0xf0]  ;;  %v2661_v5 = vld [vmem:[%s4342_s1 + $0x60] sm:$0xf]  ;;  %v3026_v6 = vld [vmem:[%s4342_s1 + $0x64] sm:$0xf0] }
   0xd   : > { %v2674_v7 = vor.u32 %v3027_v2, %v2671_v4  ;;  %v3025_v8 = vld [vmem:[%s4342_s1 + $0x64] sm:$0xf]  ;;  %v2663_v9 = vld [vmem:[%s4342_s1 + $0x68] sm:$0xf0]  ;;  %v2662_v10 = vor.u32 %v3026_v6, %v2661_v5  ;;  %v2653_v12 = vld [vmem:[%s4342_s1 + $0x50] sm:$0xf] }
   0xe   : > { %566 = vmatpush.bf16.msra.mxu0 %v2670_v3  ;;  %v2666_v11 = vor.u32 %v3025_v8, %v2663_v9  ;;  %v3024_v13 = vld [vmem:[%s4342_s1 + $0x54] sm:$0xf0]  ;;  %v3023_v14 = vld [vmem:[%s4342_s1 + $0x54] sm:$0xf]  ;;  %v2655_v15 = vld [vmem:[%s4342_s1 + $0x58] sm:$0xf0] }
   0xf   : > { %655 = vmatpush.bf16.msra.mxu1 %v2674_v7  ;;  %v2654_v16 = vor.u32 %v3024_v13, %v2653_v12  ;;  %v2658_v17 = vor.u32 %v3023_v14, %v2655_v15  ;;  %v2645_v18 = vld [vmem:[%s4342_s1 + $0x40] sm:$0xf]  ;;  %v3022_v19 = vld [vmem:[%s4342_s1 + $0x44] sm:$0xf0]  ;;  %v3021_v20 = vld [vmem:[%s4342_s1 + $0x44] sm:$0xf] }
  0x10   : > { %v2647_v21 = vld [vmem:[%s4342_s1 + $0x48] sm:$0xf0]  ;;  %v2646_v22 = vor.u32 %v3022_v19, %v2645_v18  ;;  %v2637_v24 = vld [vmem:[%s4342_s1 + $0x30] sm:$0xf]  ;;  %v3020_v25 = vld [vmem:[%s4342_s1 + $0x34] sm:$0xf0] }
  0x11   : > { %v2650_v23 = vor.u32 %v3021_v20, %v2647_v21  ;;  %v3019_v26 = vld [vmem:[%s4342_s1 + $0x34] sm:$0xf]  ;;  %v2639_v27 = vld [vmem:[%s4342_s1 + $0x38] sm:$0xf0]  ;;  %v2638_v28 = vor.u32 %v3020_v25, %v2637_v24  ;;  %v2629_v30 = vld [vmem:[%s4342_s1 + $0x20] sm:$0xf] }
  0x12   : > { %567 = vmatpush.bf16.msra.mxu0 %v2662_v10  ;;  %v2642_v29 = vor.u32 %v3019_v26, %v2639_v27  ;;  %v3018_v31 = vld [vmem:[%s4342_s1 + $0x24] sm:$0xf0]  ;;  %v3017_v32 = vld [vmem:[%s4342_s1 + $0x24] sm:$0xf]  ;;  %v2631_v33 = vld [vmem:[%s4342_s1 + $0x28] sm:$0xf0] }
  0x13   : > { %656 = vmatpush.bf16.msra.mxu1 %v2666_v11  ;;  %v2630_v34 = vor.u32 %v3018_v31, %v2629_v30  ;;  %v2634_v35 = vor.u32 %v3017_v32, %v2631_v33  ;;  %v2621_v36 = vld [vmem:[%s4342_s1 + $0x10] sm:$0xf]  ;;  %v3016_v37 = vld [vmem:[%s4342_s1 + $0x14] sm:$0xf0]  ;;  %s4352_s13 = smov (!%p325_p3, %s2543_s13), 63 }
  0x14   : > { %v3015_v38 = vld [vmem:[%s4342_s1 + $0x14] sm:$0xf]  ;;  %v2623_v39 = vld [vmem:[%s4342_s1 + $0x18] sm:$0xf0]  ;;  %v2622_v40 = vor.u32 %v3016_v37, %v2621_v36  ;;  %v2613_v41 = vld [vmem:[%s4342_s1] sm:$0xf] }
  0x15   : > { %v2626_v42 = vor.u32 %v3015_v38, %v2623_v39  ;;  %v3014_v43 = vld [vmem:[%s4342_s1 + $0x4] sm:$0xf0]  ;;  %v3013_v44 = vld [vmem:[%s4342_s1 + $0x4] sm:$0xf]  ;;  %s2544_s17 = sshll.u32 %s4352_s13, 2  ;;  %s2546_s22 = sshll.u32 %s4352_s13, 3 }
  0x16   : > { %568 = vmatpush.bf16.msra.mxu0 %v2654_v16  ;;  %v2615_v45 = vld [vmem:[%s4342_s1 + $0x8] sm:$0xf0]  ;;  %v3043_v46 = vld [vmem:[%s4344_s3 + $0x74] sm:$0xf]  ;;  %v2735_v47 = vld [vmem:[%s4344_s3 + $0x78] sm:$0xf0]  ;;  %v2614_v50 = vor.u32 %v3014_v43, %v2613_v41  ;;  %s3300_s29 = scalar_lea.vmem %s4341_s0, %s2544_s17  ;;  %s4252_s25 = scalar_lea.vmem %s4350_s9, %s2546_s22 }
  0x17   : > { %657 = vmatpush.bf16.msra.mxu1 %v2658_v17  ;;  %v3059_v48 = vld [vmem:[%s4344_s3 + $0xf4] sm:$0xf]  ;;  %v2799_v49 = vld [vmem:[%s4344_s3 + $0xf8] sm:$0xf0]  ;;  %v2618_v51 = vor.u32 %v3013_v44, %v2615_v45  ;;  %v2738_v52 = vor.u32 %v3043_v46, %v2735_v47  ;;  %v2997_v54 = vld [vmem:[%s3300_s29] sm:$0xff] }
  0x18   : > { %v2802_v53 = vor.u32 %v3059_v48, %v2799_v49  ;;  %v3041_v55 = vld [vmem:[%s4344_s3 + $0x64] sm:$0xf]  ;;  %v2727_v56 = vld [vmem:[%s4344_s3 + $0x68] sm:$0xf0]  ;;  %v2999_v62 = vld [vmem:[%s3300_s29 + $0x10] sm:$0xff] }
  0x19   : > { %v3057_v57 = vld [vmem:[%s4344_s3 + $0xe4] sm:$0xf]  ;;  %v2730_v58 = vor.u32 %v3041_v55, %v2727_v56  ;;  %v2791_v59 = vld [vmem:[%s4344_s3 + $0xe8] sm:$0xf0]  ;;  %v3039_v63 = vld [vmem:[%s4344_s3 + $0x54] sm:$0xf] }
  0x1a   : > { %569 = vmatpush.bf16.msra.mxu0 %v2646_v22  ;;  %v2794_v60 = vor.u32 %v3057_v57, %v2791_v59  ;;  %v2998_v61 = vld [vmem:[%s3300_s29 + $0x8] sm:$0xff]  ;;  %v2719_v0 = vld [vmem:[%s4344_s3 + $0x58] sm:$0xf0]  ;;  %v3055_v1 = vld [vmem:[%s4344_s3 + $0xd4] sm:$0xf] }
  0x1b   : > { %658 = vmatpush.bf16.msra.mxu1 %v2650_v23  ;;  %v2722_v2 = vor.u32 %v3039_v63, %v2719_v0  ;;  %v2783_v3 = vld [vmem:[%s4344_s3 + $0xd8] sm:$0xf0]  ;;  %v3001_v6 = vld [vmem:[%s3300_s29 + $0x20] sm:$0xff]  ;;  %v2711_v8 = vld [vmem:[%s4344_s3 + $0x48] sm:$0xf0] }
  0x1c   : > { %v2786_v4 = vor.u32 %v3055_v1, %v2783_v3  ;;  %v3000_v5 = vld [vmem:[%s3300_s29 + $0x18] sm:$0xff]  ;;  %v3037_v7 = vld [vmem:[%s4344_s3 + $0x44] sm:$0xf]  ;;  %v2775_v11 = vld [vmem:[%s4344_s3 + $0xc8] sm:$0xf0] }
  0x1d   : > { %v3053_v9 = vld [vmem:[%s4344_s3 + $0xc4] sm:$0xf]  ;;  %v2714_v10 = vor.u32 %v3037_v7, %v2711_v8  ;;  %v2733_v12 = vld [vmem:[%s4344_s3 + $0x70] sm:$0xf]  ;;  %v3044_v13 = vld [vmem:[%s4344_s3 + $0x74] sm:$0xf0] }
  0x1e   : > { %570 = vmatpush.bf16.msra.mxu0 %v2638_v28  ;;  %v2778_v14 = vor.u32 %v3053_v9, %v2775_v11  ;;  %v2734_v15 = vor.u32 %v3044_v13, %v2733_v12  ;;  %v2797_v16 = vld [vmem:[%s4344_s3 + $0xf0] sm:$0xf]  ;;  %v3060_v17 = vld [vmem:[%s4344_s3 + $0xf4] sm:$0xf0]  ;;  %v3002_v19 = vld [vmem:[%s3300_s29 + $0x28] sm:$0xff] }
  0x1f   : > { %659 = vmatpush.bf16.msra.mxu1 %v2642_v29  ;;  %v2798_v18 = vor.u32 %v3060_v17, %v2797_v16  ;;  %v2725_v20 = vld [vmem:[%s4344_s3 + $0x60] sm:$0xf]  ;;  %v3042_v21 = vld [vmem:[%s4344_s3 + $0x64] sm:$0xf0]  ;;  %v2717_v26 = vld [vmem:[%s4344_s3 + $0x50] sm:$0xf] }
  0x20   : > { %1038 = vmatpush.bf16.msra.mxu2 %v2734_v15  ;;  %v2789_v22 = vld [vmem:[%s4344_s3 + $0xe0] sm:$0xf]  ;;  %v2726_v23 = vor.u32 %v3042_v21, %v2725_v20  ;;  %v3058_v24 = vld [vmem:[%s4344_s3 + $0xe4] sm:$0xf0]  ;;  %v3040_v27 = vld [vmem:[%s4344_s3 + $0x54] sm:$0xf0] }
  0x21   : > { %1127 = vmatpush.bf16.msra.mxu3 %v2798_v18  ;;  %v2790_v25 = vor.u32 %v3058_v24, %v2789_v22  ;;  %v2781_v28 = vld [vmem:[%s4344_s3 + $0xd0] sm:$0xf]  ;;  %v2718_v29 = vor.u32 %v3040_v27, %v2717_v26  ;;  %v3056_v30 = vld [vmem:[%s4344_s3 + $0xd4] sm:$0xf0]  ;;  %v2709_v32 = vld [vmem:[%s4344_s3 + $0x40] sm:$0xf] }
  0x22   : > { %571 = vmatpush.bf16.msra.mxu0 %v2630_v34  ;;  %v2782_v31 = vor.u32 %v3056_v30, %v2781_v28  ;;  %v3038_v33 = vld [vmem:[%s4344_s3 + $0x44] sm:$0xf0]  ;;  %v2773_v34 = vld [vmem:[%s4344_s3 + $0xc0] sm:$0xf]  ;;  %v2701_v38 = vld [vmem:[%s4344_s3 + $0x30] sm:$0xf] }
  0x23   : > { %660 = vmatpush.bf16.msra.mxu1 %v2634_v35  ;;  %v3054_v35 = vld [vmem:[%s4344_s3 + $0xc4] sm:$0xf0]  ;;  %v2710_v36 = vor.u32 %v3038_v33, %v2709_v32  ;;  %v3036_v39 = vld [vmem:[%s4344_s3 + $0x34] sm:$0xf0]  ;;  %v3003_v41 = vld [vmem:[%s3300_s29 + $0x30] sm:$0xff] }
  0x24   : > { %1039 = vmatpush.bf16.msra.mxu2 %v2726_v23  ;;  %v2774_v37 = vor.u32 %v3054_v35, %v2773_v34  ;;  %v3052_v43 = vld [vmem:[%s4344_s3 + $0xb4] sm:$0xf0]  ;;  %v2693_v45 = vld [vmem:[%s4344_s3 + $0x20] sm:$0xf]  ;;  %v3034_v46 = vld [vmem:[%s4344_s3 + $0x24] sm:$0xf0] }
  0x25   : > { %1128 = vmatpush.bf16.msra.mxu3 %v2790_v25  ;;  %v2694_v47 = vor.u32 %v3034_v46, %v2693_v45  ;;  %v2757_v48 = vld [vmem:[%s4344_s3 + $0xa0] sm:$0xf]  ;;  %v3050_v49 = vld [vmem:[%s4344_s3 + $0xa4] sm:$0xf0]  ;;  %v2767_v55 = vld [vmem:[%s4344_s3 + $0xb8] sm:$0xf0] }
  0x26   : > { %572 = vmatpush.bf16.msra.mxu0 %v2622_v40  ;;  %v2765_v40 = vld [vmem:[%s4344_s3 + $0xb0] sm:$0xf]  ;;  %v2677_v63 = vld [vmem:[%s4344_s3] sm:$0xf]  ;;  %v3030_v0 = vld [vmem:[%s4344_s3 + $0x4] sm:$0xf0] }
  0x27   : > { %661 = vmatpush.bf16.msra.mxu1 %v2626_v42  ;;  %v2702_v42 = vor.u32 %v3036_v39, %v2701_v38  ;;  %v2766_v44 = vor.u32 %v3052_v43, %v2765_v40  ;;  %v2685_v57 = vld [vmem:[%s4344_s3 + $0x10] sm:$0xf]  ;;  %v2741_v1 = vld [vmem:[%s4344_s3 + $0x80] sm:$0xf]  ;;  %v3046_v3 = vld [vmem:[%s4344_s3 + $0x84] sm:$0xf0] }
  0x28   : > { %1040 = vmatpush.bf16.msra.mxu2 %v2718_v29  ;;  %v2749_v59 = vld [vmem:[%s4344_s3 + $0x90] sm:$0xf]  ;;  %v3076_v7 = vld [vmem:[%s4346_s5 + $0x74] sm:$0xf0]  ;;  %v3005_v12 = vld [vmem:[%s3300_s29 + $0x40] sm:$0xff] }
  0x29   : > { %1129 = vmatpush.bf16.msra.mxu3 %v2782_v31  ;;  %v2925_v9 = vld [vmem:[%s4346_s5 + $0xf0] sm:$0xf]  ;;  %v384_v13 = vld [vmem:[%s4343_s2] sm:$0x3]  ;;  %v3033_v18 = vld [vmem:[%s4344_s3 + $0x24] sm:$0xf] }
  0x2a   : > { %573 = vmatpush.bf16.msra.mxu0 %v2614_v50  ;;  %v3035_v50 = vld [vmem:[%s4344_s3 + $0x34] sm:$0xf]  ;;  %v3470_v16 = vperm.slane %v384_v13, 0  ;;  %v3472_v17 = vperm.slane %v384_v13, 1  ;;  %v3049_v21 = vld [vmem:[%s4344_s3 + $0xa4] sm:$0xf] }
  0x2b   : > { %662 = vmatpush.bf16.msra.mxu1 %v2618_v51  ;;  %v2703_v51 = vld [vmem:[%s4344_s3 + $0x38] sm:$0xf0]  ;;  %v2759_v22 = vld [vmem:[%s4344_s3 + $0xa8] sm:$0xf0]  ;;  %v2853_v38 = vld [vmem:[%s4346_s5 + $0x60] sm:$0xf] }
  0x2c   : > { %1041 = vmatpush.bf16.msra.mxu2 %v2710_v36  ;;  %v2762_v23 = vor.u32 %v3049_v21, %v2759_v22  ;;  %v3006_v36 = vld [vmem:[%s3300_s29 + $0x48] sm:$0xff]  ;;  %v2909_v22 = vld [vmem:[%s4346_s5 + $0xd0] sm:$0xf] }
  0x2d   : > { %574 = vmatmul.bf16.vlgmr.msra.gmra.mxu0 %v2997_v54  ;;  %1130 = vmatpush.bf16.msra.mxu3 %v2774_v37  ;;  %v3074_v39 = vld [vmem:[%s4346_s5 + $0x64] sm:$0xf0] }
  0x2e   : > { %1216 = vmatpush.bf16.msrb.mxu0 %v2738_v52  ;;  %663 = vmatmul.bf16.vlgmr.msra.gmra.mxu1 %v2997_v54  ;;  %v2758_v52 = vor.u32 %v3050_v49, %v2757_v48  ;;  %v2706_v54 = vor.u32 %v3035_v50, %v2703_v51  ;;  %v3090_v43 = vld [vmem:[%s4346_s5 + $0xe4] sm:$0xf0] }
  0x2f   : > { %1305 = vmatpush.bf16.msrb.mxu1 %v2802_v53  ;;  %v3051_v53 = vld [vmem:[%s4344_s3 + $0xb4] sm:$0xf] }
  0x30   : > { %1042 = vmatpush.bf16.msra.mxu2 %v2702_v42  ;;  %v2770_v56 = vor.u32 %v3051_v53, %v2767_v55  ;;  %v2917_v42 = vld [vmem:[%s4346_s5 + $0xe0] sm:$0xf] }
  0x31   : > { %1131 = vmatpush.bf16.msra.mxu3 %v2766_v44  ;;  %v2918_v44 = vor.u32 %v3090_v43, %v2917_v42  ;;  %v3029_v42 = vld [vmem:[%s4344_s3 + $0x4] sm:$0xf]  ;;  %v2679_v43 = vld [vmem:[%s4344_s3 + $0x8] sm:$0xf0] }
  0x32   : > { %1217 = vmatpush.bf16.msrb.mxu0 %v2730_v58  ;;  %v3032_v58 = vld [vmem:[%s4344_s3 + $0x14] sm:$0xf0] }
  0x33   : > { %1306 = vmatpush.bf16.msrb.mxu1 %v2794_v60  ;;  %v2686_v60 = vor.u32 %v3032_v58, %v2685_v57  ;;  %v3007_v57 = vld [vmem:[%s3300_s29 + $0x50] sm:$0xff] }
  0x34   : > { %1043 = vmatpush.bf16.msra.mxu2 %v2694_v47 }
  0x35   : > { %1132 = vmatpush.bf16.msra.mxu3 %v2758_v52 }
  0x36   : > { %1218 = vmatpush.bf16.msrb.mxu0 %v2722_v2  ;;  %v2678_v2 = vor.u32 %v3030_v0, %v2677_v63  ;;  %v3047_v63 = vld [vmem:[%s4344_s3 + $0x94] sm:$0xf]  ;;  %v2751_v0 = vld [vmem:[%s4344_s3 + $0x98] sm:$0xf0] }
  0x37   : > { %1307 = vmatpush.bf16.msrb.mxu1 %v2786_v4  ;;  %v2742_v4 = vor.u32 %v3046_v3, %v2741_v1  ;;  %v2754_v1 = vor.u32 %v3047_v63, %v2751_v0  ;;  %v2837_v0 = vld [vmem:[%s4346_s5 + $0x40] sm:$0xf] }
  0x38   : > { %1044 = vmatpush.bf16.msra.mxu2 %v2686_v60  ;;  %v3031_v60 = vld [vmem:[%s4344_s3 + $0x14] sm:$0xf] }
  0x3a   : > { %1219 = vmatpush.bf16.msrb.mxu0 %v2714_v10  ;;  %v3092_v10 = vld [vmem:[%s4346_s5 + $0xf4] sm:$0xf0] }
  0x3b   : > { %1308 = vmatpush.bf16.msrb.mxu1 %v2778_v14  ;;  %v2926_v11 = vor.u32 %v3092_v10, %v2925_v9 }
  0x3c   : > { %1045 = vmatpush.bf16.msra.mxu2 %v2678_v2 }
  0x3d   : > { %579 = vmatmul.bf16.gmra.mxu0 %v2998_v61 }
  0x3e   : > { %668 = vmatmul.bf16.gmra.mxu1 %v2998_v61  ;;  %1220 = vmatpush.bf16.msrb.mxu0 %v2706_v54  ;;  %v3048_v61 = vld [vmem:[%s4344_s3 + $0x94] sm:$0xf0] }
  0x3f   : > { %1309 = vmatpush.bf16.msrb.mxu1 %v2770_v56 }
  0x43   : > { %1310 = vmatpush.bf16.msrb.mxu1 %v2762_v23  ;;  %v3088_v23 = vld [vmem:[%s4346_s5 + $0xd4] sm:$0xf0] }
  0x47   : > { %1311 = vmatpush.bf16.msrb.mxu1 %v2754_v1  ;;  %v3070_v1 = vld [vmem:[%s4346_s5 + $0x44] sm:$0xf0] }
  0x4d   : > { %584 = vmatmul.bf16.gmra.mxu0 %v2999_v62 }
  0x4e   : > { %673 = vmatmul.bf16.gmra.mxu1 %v2999_v62  ;;  %v2750_v62 = vor.u32 %v3048_v61, %v2749_v59  ;;  %v2687_v61 = vld [vmem:[%s4344_s3 + $0x18] sm:$0xf0] }
  0x50   : > { %1133 = vmatpush.bf16.msra.mxu3 %v2750_v62  ;;  %v2690_v62 = vor.u32 %v3031_v60, %v2687_v61 }
  0x54   : > { %1134 = vmatpush.bf16.msra.mxu3 %v2742_v4 }
  0x58   : > { %1777 = vmatpush.bf16.msrb.mxu3 %v2926_v11 }
  0x5c   : > { %1778 = vmatpush.bf16.msrb.mxu3 %v2918_v44  ;;  %v2682_v44 = vor.u32 %v3029_v42, %v2679_v43 }
  0x5d   : > { %589 = vmatmul.bf16.gmra.mxu0 %v3000_v5 }
  0x5e   : > { %678 = vmatmul.bf16.gmra.mxu1 %v3000_v5  ;;  %v3004_v5 = vld [vmem:[%s3300_s29 + $0x38] sm:$0xff] }
  0x6d   : > { %594 = vmatmul.bf16.gmra.mxu0 %v3001_v6 }
  0x6e   : > { %683 = vmatmul.bf16.gmra.mxu1 %v3001_v6  ;;  %v2861_v6 = vld [vmem:[%s4346_s5 + $0x70] sm:$0xf] }
  0x6f   : > { %v2862_v8 = vor.u32 %v3076_v7, %v2861_v6 }
  0x71   : > { %1688 = vmatpush.bf16.msrb.mxu2 %v2862_v8 }
  0x7d   : > { %599 = vmatmul.bf16.gmra.mxu0 %v3002_v19 }
  0x7e   : > { %688 = vmatmul.bf16.gmra.mxu1 %v3002_v19  ;;  %v2695_v19 = vld [vmem:[%s4344_s3 + $0x28] sm:$0xf0] }
  0x7f   : > { %v2698_v20 = vor.u32 %v3033_v18, %v2695_v19  ;;  %v2845_v18 = vld [vmem:[%s4346_s5 + $0x50] sm:$0xf]  ;;  %v3072_v19 = vld [vmem:[%s4346_s5 + $0x54] sm:$0xf0] }
  0x80   : > { %v2846_v21 = vor.u32 %v3072_v19, %v2845_v18 }
  0x81   : > { %1221 = vmatpush.bf16.msrb.mxu0 %v2698_v20 }
  0x85   : > { %1222 = vmatpush.bf16.msrb.mxu0 %v2690_v62  ;;  %v3010_v62 = vld [vmem:[%s3300_s29 + $0x68] sm:$0xff] }
  0x89   : > { %1223 = vmatpush.bf16.msrb.mxu0 %v2682_v44 }
  0x8d   : > { %604 = vmatmul.bf16.gmra.mxu0 %v3003_v41 }
  0x8e   : > { %693 = vmatmul.bf16.gmra.mxu1 %v3003_v41  ;;  %v2854_v41 = vor.u32 %v3074_v39, %v2853_v38  ;;  %v3009_v39 = vld [vmem:[%s3300_s29 + $0x60] sm:$0xff] }
  0x90   : > { %1689 = vmatpush.bf16.msrb.mxu2 %v2854_v41 }
  0x94   : > { %1690 = vmatpush.bf16.msrb.mxu2 %v2846_v21 }
  0x9d   : > { %609 = vmatmul.bf16.gmra.mxu0 %v3004_v5 }
  0x9e   : > { %698 = vmatmul.bf16.gmra.mxu1 %v3004_v5 }
  0xaa   : > { %v575_v14 = vpop.f32.mrf.mxu0 }
  0xab   : > { %v664_v15 = vpop.f32.mrf.mxu1  ;;  %v576_v24 = vadd.f32 %v575_v14, %v3470_v16  ;;  %v3008_v14 = vld [vmem:[%s3300_s29 + $0x58] sm:$0xff] }
  0xac   : > { %v665_v25 = vadd.f32 %v664_v15, %v3472_v17 }
  0xad   : > { %614 = vmatmul.bf16.gmra.mxu0 %v3005_v12  ;;  %v744_v30 = vmax.f32 %v576_v24, 0.0  ;;  %v2910_v24 = vor.u32 %v3088_v23, %v2909_v22  ;;  %v3011_v23 = vld [vmem:[%s3300_s29 + $0x70] sm:$0xff] }
  0xae   : > { %703 = vmatmul.bf16.gmra.mxu1 %v3005_v12  ;;  %v745_v32 = vmax.f32 %v665_v25, 0.0 }
  0xaf   : > { %1779 = vmatpush.bf16.msrb.mxu3 %v2910_v24 }
  0xb2   : > { %v577_v26 = vpop.f32.mrf.mxu0 }
  0xb3   : > { %v578_v27 = vadd.f32 %v577_v26, %v3470_v16  ;;  %v666_v28 = vpop.f32.mrf.mxu1 }
  0xb4   : > { %v667_v29 = vadd.f32 %v666_v28, %v3472_v17 }
  0xb5   : > { %v746_v31 = vmax.f32 %v578_v27, 0.0 }
  0xb6   : > { %v747_v33 = vmax.f32 %v667_v29, 0.0 }
  0xb7   : > { %v3490_v34 = vpack.c.bf16 %v746_v31, %v744_v30 }
  0xb8   : > { %v3492_v35 = vpack.c.bf16 %v747_v33, %v745_v32 }
  0xb9   : > { %1046 = vmatmul.bf16.vlgmr.msra.gmra.mxu2 %v3490_v34 }
  0xba   : > { %1135 = vmatmul.bf16.vlgmr.msra.gmra.mxu3 %v3492_v35  ;;  %v580_v37 = vpop.f32.mrf.mxu0 }
  0xbb   : > { %v669_v40 = vpop.f32.mrf.mxu1  ;;  %v581_v45 = vadd.f32 %v580_v37, %v3470_v16 }
  0xbc   : > { %v670_v46 = vadd.f32 %v669_v40, %v3472_v17 }
  0xbd   : > { %619 = vmatmul.bf16.gmra.mxu0 %v3006_v36  ;;  %v748_v51 = vmax.f32 %v581_v45, 0.0  ;;  %v3045_v45 = vld [vmem:[%s4344_s3 + $0x84] sm:$0xf] }
  0xbe   : > { %708 = vmatmul.bf16.gmra.mxu1 %v3006_v36  ;;  %v749_v53 = vmax.f32 %v670_v46, 0.0  ;;  %v2743_v46 = vld [vmem:[%s4344_s3 + $0x88] sm:$0xf0] }
  0xc2   : > { %v582_v47 = vpop.f32.mrf.mxu0 }
  0xc3   : > { %v583_v48 = vadd.f32 %v582_v47, %v3470_v16  ;;  %v671_v49 = vpop.f32.mrf.mxu1  ;;  %v2746_v47 = vor.u32 %v3045_v45, %v2743_v46 }
  0xc4   : > { %v672_v50 = vadd.f32 %v671_v49, %v3472_v17 }
  0xc5   : > { %v750_v52 = vmax.f32 %v583_v48, 0.0  ;;  %1312 = vmatpush.bf16.msrb.mxu1 %v2746_v47 }
  0xc6   : > { %v751_v54 = vmax.f32 %v672_v50, 0.0 }
  0xc7   : > { %v3513_v55 = vpack.c.bf16 %v750_v52, %v748_v51 }
  0xc8   : > { %v3515_v56 = vpack.c.bf16 %v751_v54, %v749_v53 }
  0xc9   : > { %1051 = vmatmul.bf16.gmra.mxu2 %v3513_v55 }
  0xca   : > { %1140 = vmatmul.bf16.gmra.mxu3 %v3515_v56  ;;  %v585_v58 = vpop.f32.mrf.mxu0 }
  0xcb   : > { %v674_v59 = vpop.f32.mrf.mxu1  ;;  %v586_v2 = vadd.f32 %v585_v58, %v3470_v16 }
  0xcc   : > { %v675_v3 = vadd.f32 %v674_v59, %v3472_v17 }
  0xcd   : > { %624 = vmatmul.bf16.gmra.mxu0 %v3007_v57  ;;  %v752_v8 = vmax.f32 %v586_v2, 0.0 }
  0xce   : > { %713 = vmatmul.bf16.gmra.mxu1 %v3007_v57  ;;  %v753_v10 = vmax.f32 %v675_v3, 0.0  ;;  %v2838_v3 = vor.u32 %v3070_v1, %v2837_v0 }
  0xd0   : > { %1691 = vmatpush.bf16.msrb.mxu2 %v2838_v3 }
  0xd2   : > { %v587_v4 = vpop.f32.mrf.mxu0 }
  0xd3   : > { %v588_v5 = vadd.f32 %v587_v4, %v3470_v16  ;;  %v676_v6 = vpop.f32.mrf.mxu1  ;;  %v2901_v4 = vld [vmem:[%s4346_s5 + $0xc0] sm:$0xf] }
  0xd4   : > { %v677_v7 = vadd.f32 %v676_v6, %v3472_v17 }
  0xd5   : > { %v754_v9 = vmax.f32 %v588_v5, 0.0  ;;  %v3086_v5 = vld [vmem:[%s4346_s5 + $0xc4] sm:$0xf0] }
  0xd6   : > { %v755_v11 = vmax.f32 %v677_v7, 0.0  ;;  %v2902_v6 = vor.u32 %v3086_v5, %v2901_v4 }
  0xd7   : > { %v3536_v12 = vpack.c.bf16 %v754_v9, %v752_v8 }
  0xd8   : > { %v3538_v13 = vpack.c.bf16 %v755_v11, %v753_v10  ;;  %1780 = vmatpush.bf16.msrb.mxu3 %v2902_v6 }
  0xd9   : > { %1056 = vmatmul.bf16.gmra.mxu2 %v3536_v12 }
  0xda   : > { %1145 = vmatmul.bf16.gmra.mxu3 %v3538_v13  ;;  %v590_v15 = vpop.f32.mrf.mxu0 }
  0xdb   : > { %v679_v20 = vpop.f32.mrf.mxu1  ;;  %v591_v25 = vadd.f32 %v590_v15, %v3470_v16 }
  0xdc   : > { %v680_v26 = vadd.f32 %v679_v20, %v3472_v17 }
  0xdd   : > { %629 = vmatmul.bf16.gmra.mxu0 %v3008_v14  ;;  %v756_v31 = vmax.f32 %v591_v25, 0.0 }
  0xde   : > { %718 = vmatmul.bf16.gmra.mxu1 %v3008_v14  ;;  %v757_v33 = vmax.f32 %v680_v26, 0.0  ;;  %v3075_v26 = vld [vmem:[%s4346_s5 + $0x74] sm:$0xf] }
  0xe2   : > { %v592_v27 = vpop.f32.mrf.mxu0 }
  0xe3   : > { %v593_v28 = vadd.f32 %v592_v27, %v3470_v16  ;;  %v681_v29 = vpop.f32.mrf.mxu1  ;;  %v2863_v27 = vld [vmem:[%s4346_s5 + $0x78] sm:$0xf0] }
  0xe4   : > { %v682_v30 = vadd.f32 %v681_v29, %v3472_v17  ;;  %v3091_v29 = vld [vmem:[%s4346_s5 + $0xf4] sm:$0xf] }
  0xe5   : > { %v758_v32 = vmax.f32 %v593_v28, 0.0  ;;  %v2866_v28 = vor.u32 %v3075_v26, %v2863_v27 }
  0xe6   : > { %v759_v36 = vmax.f32 %v682_v30, 0.0  ;;  %v2927_v30 = vld [vmem:[%s4346_s5 + $0xf8] sm:$0xf0] }
  0xe7   : > { %v3559_v37 = vpack.c.bf16 %v758_v32, %v756_v31  ;;  %v2930_v31 = vor.u32 %v3091_v29, %v2927_v30  ;;  %1866 = vmatpush.bf16.msra.mxu0 %v2866_v28 }
  0xe8   : > { %v3561_v38 = vpack.c.bf16 %v759_v36, %v757_v33 }
  0xe9   : > { %1061 = vmatmul.bf16.gmra.mxu2 %v3559_v37  ;;  %1955 = vmatpush.bf16.msra.mxu1 %v2930_v31  ;;  %v3678_v31 = vld [vmem:[%s4345_s4] sm:$0x3] }
  0xea   : > { %1150 = vmatmul.bf16.gmra.mxu3 %v3561_v38  ;;  %v595_v40 = vpop.f32.mrf.mxu0 }
  0xeb   : > { %v684_v41 = vpop.f32.mrf.mxu1  ;;  %v596_v48 = vadd.f32 %v595_v40, %v3470_v16 }
  0xec   : > { %v685_v49 = vadd.f32 %v684_v41, %v3472_v17 }
  0xed   : > { %634 = vmatmul.bf16.gmra.mxu0 %v3009_v39  ;;  %v760_v54 = vmax.f32 %v596_v48, 0.0  ;;  %v3012_v48 = vld [vmem:[%s3300_s29 + $0x78] sm:$0xff] }
  0xee   : > { %723 = vmatmul.bf16.gmra.mxu1 %v3009_v39  ;;  %v761_v58 = vmax.f32 %v685_v49, 0.0 }
  0xf2   : > { %v597_v50 = vpop.f32.mrf.mxu0 }
  0xf3   : > { %v598_v51 = vadd.f32 %v597_v50, %v3470_v16  ;;  %v686_v52 = vpop.f32.mrf.mxu1  ;;  %v2829_v50 = vld [vmem:[%s4346_s5 + $0x30] sm:$0xf] }
  0xf4   : > { %v687_v53 = vadd.f32 %v686_v52, %v3472_v17 }
  0xf5   : > { %v762_v57 = vmax.f32 %v598_v51, 0.0  ;;  %v3068_v51 = vld [vmem:[%s4346_s5 + $0x34] sm:$0xf0] }
  0xf6   : > { %v763_v59 = vmax.f32 %v687_v53, 0.0  ;;  %v2830_v53 = vor.u32 %v3068_v51, %v2829_v50  ;;  %v3082_v50 = vld [vmem:[%s4346_s5 + $0xa4] sm:$0xf0] }
  0xf7   : > { %v3582_v60 = vpack.c.bf16 %v762_v57, %v760_v54  ;;  %v2893_v54 = vld [vmem:[%s4346_s5 + $0xb0] sm:$0xf]  ;;  %v3084_v57 = vld [vmem:[%s4346_s5 + $0xb4] sm:$0xf0] }
  0xf8   : > { %v3584_v61 = vpack.c.bf16 %v763_v59, %v761_v58  ;;  %1692 = vmatpush.bf16.msrb.mxu2 %v2830_v53  ;;  %v2894_v58 = vor.u32 %v3084_v57, %v2893_v54 }
  0xf9   : > { %1066 = vmatmul.bf16.gmra.mxu2 %v3582_v60 }
  0xfa   : > { %1155 = vmatmul.bf16.gmra.mxu3 %v3584_v61  ;;  %v600_v63 = vpop.f32.mrf.mxu0 }
  0xfb   : > { %v689_v2 = vpop.f32.mrf.mxu1  ;;  %v601_v7 = vadd.f32 %v600_v63, %v3470_v16  ;;  %1781 = vmatpush.bf16.msrb.mxu3 %v2894_v58 }
  0xfc   : > { %v690_v8 = vadd.f32 %v689_v2, %v3472_v17 }
  0xfd   : > { %639 = vmatmul.bf16.gmra.mxu0 %v3010_v62  ;;  %v764_v15 = vmax.f32 %v601_v7, 0.0 }
  0xfe   : > { %728 = vmatmul.bf16.gmra.mxu1 %v3010_v62  ;;  %v765_v19 = vmax.f32 %v690_v8, 0.0 }
 0x102   : > { %v602_v9 = vpop.f32.mrf.mxu0 }
 0x103   : > { %v603_v10 = vadd.f32 %v602_v9, %v3470_v16  ;;  %v691_v11 = vpop.f32.mrf.mxu1 }
 0x104   : > { %v692_v14 = vadd.f32 %v691_v11, %v3472_v17 }
 0x105   : > { %v766_v18 = vmax.f32 %v603_v10, 0.0 }
 0x106   : > { %v767_v20 = vmax.f32 %v692_v14, 0.0  ;;  %v3073_v14 = vld [vmem:[%s4346_s5 + $0x64] sm:$0xf] }
 0x107   : > { %v3605_v21 = vpack.c.bf16 %v766_v18, %v764_v15  ;;  %v2855_v15 = vld [vmem:[%s4346_s5 + $0x68] sm:$0xf0]  ;;  %v3089_v18 = vld [vmem:[%s4346_s5 + $0xe4] sm:$0xf] }
 0x108   : > { %v3607_v22 = vpack.c.bf16 %v767_v20, %v765_v19 }
 0x109   : > { %1071 = vmatmul.bf16.gmra.mxu2 %v3605_v21 }
 0x10a   : > { %1160 = vmatmul.bf16.gmra.mxu3 %v3607_v22  ;;  %v605_v24 = vpop.f32.mrf.mxu0 }
 0x10b   : > { %v694_v25 = vpop.f32.mrf.mxu1  ;;  %v606_v32 = vadd.f32 %v605_v24, %v3470_v16 }
 0x10c   : > { %v695_v33 = vadd.f32 %v694_v25, %v3472_v17 }
 0x10d   : > { %644 = vmatmul.bf16.gmra.mxu0 %v3011_v23  ;;  %v768_v42 = vmax.f32 %v606_v32, 0.0 }
 0x10e   : > { %733 = vmatmul.bf16.gmra.mxu1 %v3011_v23  ;;  %v769_v44 = vmax.f32 %v695_v33, 0.0 }
 0x112   : > { %v607_v36 = vpop.f32.mrf.mxu0 }
 0x113   : > { %v608_v39 = vadd.f32 %v607_v36, %v3470_v16  ;;  %v696_v40 = vpop.f32.mrf.mxu1  ;;  %v3686_v36 = vperm.slane %v3678_v31, 0 }
 0x114   : > { %v697_v41 = vadd.f32 %v696_v40, %v3472_v17  ;;  %v2821_v40 = vld [vmem:[%s4346_s5 + $0x20] sm:$0xf] }
 0x115   : > { %v770_v43 = vmax.f32 %v608_v39, 0.0 }
 0x116   : > { %v771_v45 = vmax.f32 %v697_v41, 0.0  ;;  %v3066_v41 = vld [vmem:[%s4346_s5 + $0x24] sm:$0xf0] }
 0x117   : > { %v3628_v46 = vpack.c.bf16 %v770_v43, %v768_v42  ;;  %v2822_v43 = vor.u32 %v3066_v41, %v2821_v40 }
 0x118   : > { %v3630_v47 = vpack.c.bf16 %v771_v45, %v769_v44 }
 0x119   : > { %1076 = vmatmul.bf16.gmra.mxu2 %v3628_v46 }
 0x11a   : > { %1165 = vmatmul.bf16.gmra.mxu3 %v3630_v47  ;;  %v610_v49 = vpop.f32.mrf.mxu0  ;;  %1693 = vmatpush.bf16.msrb.mxu2 %v2822_v43 }
 0x11b   : > { %v699_v52 = vpop.f32.mrf.mxu1  ;;  %v611_v59 = vadd.f32 %v610_v49, %v3470_v16  ;;  %v2885_v49 = vld [vmem:[%s4346_s5 + $0xa0] sm:$0xf] }
 0x11c   : > { %v700_v62 = vadd.f32 %v699_v52, %v3472_v17  ;;  %v2886_v52 = vor.u32 %v3082_v50, %v2885_v49 }
 0x11d   : > { %649 = vmatmul.bf16.gmra.mxu0 %v3012_v48  ;;  %v772_v3 = vmax.f32 %v611_v59, 0.0 }
 0x11e   : > { %738 = vmatmul.bf16.gmra.mxu1 %v3012_v48  ;;  %v773_v5 = vmax.f32 %v700_v62, 0.0  ;;  %1782 = vmatpush.bf16.msrb.mxu3 %v2886_v52 }
 0x122   : > { %v612_v63 = vpop.f32.mrf.mxu0 }
 0x123   : > { %v613_v0 = vadd.f32 %v612_v63, %v3470_v16  ;;  %v701_v1 = vpop.f32.mrf.mxu1 }
 0x124   : > { %v702_v2 = vadd.f32 %v701_v1, %v3472_v17 }
 0x125   : > { %v774_v4 = vmax.f32 %v613_v0, 0.0 }
 0x126   : > { %v775_v6 = vmax.f32 %v702_v2, 0.0 }
 0x127   : > { %v3651_v7 = vpack.c.bf16 %v774_v4, %v772_v3 }
 0x128   : > { %v3653_v8 = vpack.c.bf16 %v775_v6, %v773_v5 }
 0x129   : > { %1081 = vmatmul.bf16.gmra.mxu2 %v3651_v7 }
 0x12a   : > { %1170 = vmatmul.bf16.gmra.mxu3 %v3653_v8  ;;  %v615_v9 = vpop.f32.mrf.mxu0 }
 0x12b   : > { %v704_v10 = vpop.f32.mrf.mxu1  ;;  %v616_v11 = vadd.f32 %v615_v9, %v3470_v16 }
 0x12c   : > { %v705_v19 = vadd.f32 %v704_v10, %v3472_v17 }
 0x12d   : > { %1224 = vmatmul.bf16.vlgmr.msrb.gmra.mxu0 %v3490_v34  ;;  %v2858_v34 = vor.u32 %v3073_v14, %v2855_v15  ;;  %v776_v27 = vmax.f32 %v616_v11, 0.0 }
 0x12e   : > { %1313 = vmatmul.bf16.vlgmr.msrb.gmra.mxu1 %v3492_v35  ;;  %v2919_v35 = vld [vmem:[%s4346_s5 + $0xe8] sm:$0xf0]  ;;  %v777_v29 = vmax.f32 %v705_v19, 0.0 }
 0x12f   : > { %v2922_v25 = vor.u32 %v3089_v18, %v2919_v35  ;;  %1867 = vmatpush.bf16.msra.mxu0 %v2858_v34 }
 0x131   : > { %1956 = vmatpush.bf16.msra.mxu1 %v2922_v25 }
 0x132   : > { %v617_v20 = vpop.f32.mrf.mxu0 }
 0x133   : > { %v618_v23 = vadd.f32 %v617_v20, %v3470_v16  ;;  %v706_v24 = vpop.f32.mrf.mxu1 }
 0x134   : > { %v707_v26 = vadd.f32 %v706_v24, %v3472_v17  ;;  %v2847_v24 = vld [vmem:[%s4346_s5 + $0x58] sm:$0xf0] }
 0x135   : > { %v778_v28 = vmax.f32 %v618_v23, 0.0  ;;  %v3071_v23 = vld [vmem:[%s4346_s5 + $0x54] sm:$0xf] }
 0x136   : > { %v779_v30 = vmax.f32 %v707_v26, 0.0 }
 0x137   : > { %v3680_v32 = vpack.c.bf16 %v778_v28, %v776_v27  ;;  %v2850_v27 = vor.u32 %v3071_v23, %v2847_v24 }
 0x138   : > { %v3682_v33 = vpack.c.bf16 %v779_v30, %v777_v29 }
 0x139   : > { %1086 = vmatmul.bf16.gmra.mxu2 %v3680_v32  ;;  %1868 = vmatpush.bf16.msra.mxu0 %v2850_v27 }
 0x13a   : > { %1175 = vmatmul.bf16.gmra.mxu3 %v3682_v33  ;;  %v620_v39 = vpop.f32.mrf.mxu0 }
 0x13b   : > { %v709_v42 = vpop.f32.mrf.mxu1  ;;  %v621_v53 = vadd.f32 %v620_v39, %v3470_v16 }
 0x13c   : > { %v1047_v44 = vpop.f32.mrf.mxu2  ;;  %v710_v54 = vadd.f32 %v709_v42, %v3472_v17 }
 0x13d   : > { %v1048_v45 = vadd.f32 %v1047_v44, %v3686_v36  ;;  %v1136_v48 = vpop.f32.mrf.mxu3  ;;  %1229 = vmatmul.bf16.gmra.mxu0 %v3513_v55  ;;  %v780_v62 = vmax.f32 %v621_v53, 0.0 }
 0x13e   : > { %1318 = vmatmul.bf16.gmra.mxu1 %v3515_v56  ;;  %v781_v2 = vmax.f32 %v710_v54, 0.0 }
 0x13f   : > { %v1137_v51 = vadd.f32 %v1136_v48, %v1048_v45 }
 0x141   : > { %v1394_v9 = vmax.f32 %v1137_v51, 0.0 }
 0x142   : > { %v622_v57 = vpop.f32.mrf.mxu0 }
 0x143   : > { %v623_v55 = vadd.f32 %v622_v57, %v3470_v16  ;;  %v711_v58 = vpop.f32.mrf.mxu1  ;;  %v2813_v57 = vld [vmem:[%s4346_s5 + $0x10] sm:$0xf] }
 0x144   : > { %v712_v56 = vadd.f32 %v711_v58, %v3472_v17  ;;  %v1049_v59 = vpop.f32.mrf.mxu2 }
 0x145   : > { %v782_v63 = vmax.f32 %v623_v55, 0.0  ;;  %v1050_v0 = vadd.f32 %v1049_v59, %v3686_v36  ;;  %v1138_v1 = vpop.f32.mrf.mxu3  ;;  %v3064_v55 = vld [vmem:[%s4346_s5 + $0x14] sm:$0xf0] }
 0x146   : > { %v783_v3 = vmax.f32 %v712_v56, 0.0  ;;  %v2814_v56 = vor.u32 %v3064_v55, %v2813_v57 }
 0x147   : > { %v1139_v4 = vadd.f32 %v1138_v1, %v1050_v0  ;;  %v3709_v5 = vpack.c.bf16 %v782_v63, %v780_v62  ;;  %v2877_v1 = vld [vmem:[%s4346_s5 + $0x90] sm:$0xf] }
 0x148   : > { %v3711_v6 = vpack.c.bf16 %v783_v3, %v781_v2  ;;  %1694 = vmatpush.bf16.msrb.mxu2 %v2814_v56  ;;  %v3080_v2 = vld [vmem:[%s4346_s5 + $0x94] sm:$0xf0] }
 0x149   : > { %v1396_v10 = vmax.f32 %v1139_v4, 0.0  ;;  %1091 = vmatmul.bf16.gmra.mxu2 %v3709_v5  ;;  %v2878_v4 = vor.u32 %v3080_v2, %v2877_v1 }
 0x14a   : > { %1180 = vmatmul.bf16.gmra.mxu3 %v3711_v6  ;;  %v625_v11 = vpop.f32.mrf.mxu0 }
 0x14b   : > { %v3715_v14 = vpack.c.bf16 %v1396_v10, %v1394_v9  ;;  %v714_v15 = vpop.f32.mrf.mxu1  ;;  %v626_v35 = vadd.f32 %v625_v11, %v3470_v16  ;;  %1783 = vmatpush.bf16.msrb.mxu3 %v2878_v4 }
 0x14c   : > { %v1052_v18 = vpop.f32.mrf.mxu2  ;;  %v715_v25 = vadd.f32 %v714_v15, %v3472_v17 }
 0x14d   : > { %v1053_v19 = vadd.f32 %v1052_v18, %v3686_v36  ;;  %v1141_v20 = vpop.f32.mrf.mxu3  ;;  %1234 = vmatmul.bf16.gmra.mxu0 %v3536_v12  ;;  %v3087_v12 = vld [vmem:[%s4346_s5 + $0xd4] sm:$0xf]  ;;  %v784_v41 = vmax.f32 %v626_v35, 0.0 }
 0x14e   : > { %1323 = vmatmul.bf16.gmra.mxu1 %v3538_v13  ;;  %v2911_v13 = vld [vmem:[%s4346_s5 + $0xd8] sm:$0xf0]  ;;  %v785_v45 = vmax.f32 %v715_v25, 0.0 }
 0x14f   : > { %v1142_v34 = vadd.f32 %v1141_v20, %v1053_v19  ;;  %v2914_v30 = vor.u32 %v3087_v12, %v2911_v13 }
 0x151   : > { %1957 = vmatpush.bf16.msra.mxu1 %v2914_v30  ;;  %v1398_v52 = vmax.f32 %v1142_v34, 0.0 }
 0x152   : > { %v627_v26 = vpop.f32.mrf.mxu0 }
 0x153   : > { %v628_v28 = vadd.f32 %v627_v26, %v3470_v16  ;;  %v716_v29 = vpop.f32.mrf.mxu1 }
 0x154   : > { %v717_v39 = vadd.f32 %v716_v29, %v3472_v17  ;;  %v1054_v40 = vpop.f32.mrf.mxu2 }
 0x155   : > { %v786_v42 = vmax.f32 %v628_v28, 0.0  ;;  %v1055_v43 = vadd.f32 %v1054_v40, %v3686_v36  ;;  %v1143_v44 = vpop.f32.mrf.mxu3 }
 0x156   : > { %v787_v48 = vmax.f32 %v717_v39, 0.0 }
 0x157   : > { %v1144_v49 = vadd.f32 %v1143_v44, %v1055_v43  ;;  %v3737_v50 = vpack.c.bf16 %v786_v42, %v784_v41  ;;  %v3069_v44 = vld [vmem:[%s4346_s5 + $0x44] sm:$0xf] }
 0x158   : > { %v3739_v51 = vpack.c.bf16 %v787_v48, %v785_v45  ;;  %v2839_v45 = vld [vmem:[%s4346_s5 + $0x48] sm:$0xf0] }
 0x159   : > { %v1400_v53 = vmax.f32 %v1144_v49, 0.0  ;;  %1096 = vmatmul.bf16.gmra.mxu2 %v3737_v50 }
 0x15a   : > { %1185 = vmatmul.bf16.gmra.mxu3 %v3739_v51  ;;  %v630_v54 = vpop.f32.mrf.mxu0 }
 0x15b   : > { %v719_v58 = vpop.f32.mrf.mxu1  ;;  %v3749_v59 = vpack.c.bf16 %v1400_v53, %v1398_v52  ;;  %v631_v9 = vadd.f32 %v630_v54, %v3470_v16  ;;  %v2842_v52 = vor.u32 %v3069_v44, %v2839_v45 }
 0x15c   : > { %v1057_v62 = vpop.f32.mrf.mxu2  ;;  %v720_v10 = vadd.f32 %v719_v58, %v3472_v17 }
 0x15d   : > { %v1058_v63 = vadd.f32 %v1057_v62, %v3686_v36  ;;  %v1146_v0 = vpop.f32.mrf.mxu3  ;;  %1239 = vmatmul.bf16.gmra.mxu0 %v3559_v37  ;;  %v788_v19 = vmax.f32 %v631_v9, 0.0 }
 0x15e   : > { %1328 = vmatmul.bf16.gmra.mxu1 %v3561_v38  ;;  %v789_v23 = vmax.f32 %v720_v10, 0.0  ;;  %1869 = vmatpush.bf16.msra.mxu0 %v2842_v52 }
 0x15f   : > { %v1147_v3 = vadd.f32 %v1146_v0, %v1058_v63 }
 0x161   : > { %v1402_v12 = vmax.f32 %v1147_v3, 0.0 }
 0x162   : > { %v632_v11 = vpop.f32.mrf.mxu0 }
 0x163   : > { %v633_v37 = vadd.f32 %v632_v11, %v3470_v16  ;;  %v721_v15 = vpop.f32.mrf.mxu1 }
 0x164   : > { %v722_v38 = vadd.f32 %v721_v15, %v3472_v17  ;;  %v1059_v18 = vpop.f32.mrf.mxu2  ;;  %v2805_v15 = vld [vmem:[%s4346_s5] sm:$0xf] }
 0x165   : > { %v790_v20 = vmax.f32 %v633_v37, 0.0  ;;  %v1060_v34 = vadd.f32 %v1059_v18, %v3686_v36  ;;  %v1148_v35 = vpop.f32.mrf.mxu3 }
 0x166   : > { %v791_v24 = vmax.f32 %v722_v38, 0.0  ;;  %v3062_v38 = vld [vmem:[%s4346_s5 + $0x4] sm:$0xf0] }
 0x167   : > { %v1149_v25 = vadd.f32 %v1148_v35, %v1060_v34  ;;  %v3765_v26 = vpack.c.bf16 %v790_v20, %v788_v19  ;;  %v2806_v19 = vor.u32 %v3062_v38, %v2805_v15 }
 0x168   : > { %v3767_v27 = vpack.c.bf16 %v791_v24, %v789_v23  ;;  %v2869_v24 = vld [vmem:[%s4346_s5 + $0x80] sm:$0xf] }
 0x169   : > { %v1404_v13 = vmax.f32 %v1149_v25, 0.0  ;;  %1101 = vmatmul.bf16.gmra.mxu2 %v3765_v26  ;;  %v3078_v25 = vld [vmem:[%s4346_s5 + $0x84] sm:$0xf0] }
 0x16a   : > { %1190 = vmatmul.bf16.gmra.mxu3 %v3767_v27  ;;  %v635_v28 = vpop.f32.mrf.mxu0  ;;  %1695 = vmatpush.bf16.msrb.mxu2 %v2806_v19 }
 0x16b   : > { %v724_v29 = vpop.f32.mrf.mxu1  ;;  %v3771_v30 = vpack.c.bf16 %v1404_v13, %v1402_v12  ;;  %v636_v43 = vadd.f32 %v635_v28, %v3470_v16  ;;  %v2870_v13 = vor.u32 %v3078_v25, %v2869_v24 }
 0x16c   : > { %v1062_v39 = vpop.f32.mrf.mxu2  ;;  %v725_v48 = vadd.f32 %v724_v29, %v3472_v17 }
 0x16d   : > { %v1063_v40 = vadd.f32 %v1062_v39, %v3686_v36  ;;  %v1151_v41 = vpop.f32.mrf.mxu3  ;;  %1244 = vmatmul.bf16.gmra.mxu0 %v3582_v60  ;;  %v3085_v60 = vld [vmem:[%s4346_s5 + $0xc4] sm:$0xf]  ;;  %v792_v56 = vmax.f32 %v636_v43, 0.0  ;;  %1784 = vmatpush.bf16.msrb.mxu3 %v2870_v13 }
 0x16e   : > { %1333 = vmatmul.bf16.gmra.mxu1 %v3584_v61  ;;  %v2903_v61 = vld [vmem:[%s4346_s5 + $0xc8] sm:$0xf0]  ;;  %v793_v1 = vmax.f32 %v725_v48, 0.0 }
 0x16f   : > { %v1152_v42 = vadd.f32 %v1151_v41, %v1063_v40  ;;  %v2906_v57 = vor.u32 %v3085_v60, %v2903_v61 }
 0x171   : > { %1958 = vmatpush.bf16.msra.mxu1 %v2906_v57  ;;  %v1406_v10 = vmax.f32 %v1152_v42, 0.0 }
 0x172   : > { %v637_v49 = vpop.f32.mrf.mxu0 }
 0x173   : > { %v638_v53 = vadd.f32 %v637_v49, %v3470_v16  ;;  %v726_v54 = vpop.f32.mrf.mxu1 }
 0x174   : > { %v727_v55 = vadd.f32 %v726_v54, %v3472_v17  ;;  %v1064_v58 = vpop.f32.mrf.mxu2 }
 0x175   : > { %v794_v62 = vmax.f32 %v638_v53, 0.0  ;;  %v1065_v63 = vadd.f32 %v1064_v58, %v3686_v36  ;;  %v1153_v0 = vpop.f32.mrf.mxu3 }
 0x176   : > { %v795_v2 = vmax.f32 %v727_v55, 0.0 }
 0x177   : > { %v1154_v3 = vadd.f32 %v1153_v0, %v1065_v63  ;;  %v3793_v4 = vpack.c.bf16 %v794_v62, %v792_v56 }
 0x178   : > { %v3795_v9 = vpack.c.bf16 %v795_v2, %v793_v1  ;;  %v3067_v2 = vld [vmem:[%s4346_s5 + $0x34] sm:$0xf] }
 0x179   : > { %v1408_v11 = vmax.f32 %v1154_v3, 0.0  ;;  %1106 = vmatmul.bf16.gmra.mxu2 %v3793_v4  ;;  %v2831_v3 = vld [vmem:[%s4346_s5 + $0x38] sm:$0xf0] }
 0x17a   : > { %1195 = vmatmul.bf16.gmra.mxu3 %v3795_v9  ;;  %v640_v37 = vpop.f32.mrf.mxu0 }
 0x17b   : > { %v729_v18 = vpop.f32.mrf.mxu1  ;;  %v3805_v20 = vpack.c.bf16 %v1408_v11, %v1406_v10  ;;  %v641_v28 = vadd.f32 %v640_v37, %v3470_v16  ;;  %v2834_v37 = vor.u32 %v3067_v2, %v2831_v3 }
 0x17c   : > { %v1067_v34 = vpop.f32.mrf.mxu2  ;;  %v730_v29 = vadd.f32 %v729_v18, %v3472_v17 }
 0x17d   : > { %v1068_v35 = vadd.f32 %v1067_v34, %v3686_v36  ;;  %v1156_v23 = vpop.f32.mrf.mxu3  ;;  %1249 = vmatmul.bf16.gmra.mxu0 %v3605_v21  ;;  %v796_v42 = vmax.f32 %v641_v28, 0.0 }
 0x17e   : > { %1338 = vmatmul.bf16.gmra.mxu1 %v3607_v22  ;;  %v797_v48 = vmax.f32 %v730_v29, 0.0  ;;  %1870 = vmatpush.bf16.msra.mxu0 %v2834_v37 }
 0x17f   : > { %v1157_v12 = vadd.f32 %v1156_v23, %v1068_v35 }
 0x181   : > { %v1410_v53 = vmax.f32 %v1157_v12, 0.0 }
 0x182   : > { %v642_v39 = vpop.f32.mrf.mxu0 }
 0x183   : > { %v643_v21 = vadd.f32 %v642_v39, %v3470_v16  ;;  %v731_v40 = vpop.f32.mrf.mxu1 }
 0x184   : > { %v732_v22 = vadd.f32 %v731_v40, %v3472_v17  ;;  %v1069_v41 = vpop.f32.mrf.mxu2 }
 0x185   : > { %v798_v43 = vmax.f32 %v643_v21, 0.0  ;;  %v1070_v44 = vadd.f32 %v1069_v41, %v3686_v36  ;;  %v1158_v45 = vpop.f32.mrf.mxu3 }
 0x186   : > { %v799_v49 = vmax.f32 %v732_v22, 0.0  ;;  %v3100_v22 = vld [vmem:[%s4348_s7 + $0x38] sm:$0xff] }
 0x187   : > { %v1159_v52 = vadd.f32 %v1158_v45, %v1070_v44  ;;  %v3821_v60 = vpack.c.bf16 %v798_v43, %v796_v42  ;;  %2272 = vmatpush.bf16.msra.mxu2 %v3100_v22 }
 0x188   : > { %v3823_v61 = vpack.c.bf16 %v799_v49, %v797_v48 }
 0x189   : > { %v1412_v54 = vmax.f32 %v1159_v52, 0.0  ;;  %1111 = vmatmul.bf16.gmra.mxu2 %v3821_v60  ;;  %v3108_v52 = vld [vmem:[%s4348_s7 + $0x78] sm:$0xff] }
 0x18a   : > { %1200 = vmatmul.bf16.gmra.mxu3 %v3823_v61  ;;  %v645_v57 = vpop.f32.mrf.mxu0 }
 0x18b   : > { %v734_v55 = vpop.f32.mrf.mxu1  ;;  %v3827_v58 = vpack.c.bf16 %v1412_v54, %v1410_v53  ;;  %v646_v1 = vadd.f32 %v645_v57, %v3470_v16  ;;  %2361 = vmatpush.bf16.msra.mxu3 %v3108_v52 }
 0x18c   : > { %v1072_v56 = vpop.f32.mrf.mxu2  ;;  %v735_v10 = vadd.f32 %v734_v55, %v3472_v17 }
 0x18d   : > { %v1073_v62 = vadd.f32 %v1072_v56, %v3686_v36  ;;  %v1161_v63 = vpop.f32.mrf.mxu3  ;;  %1254 = vmatmul.bf16.gmra.mxu0 %v3628_v46  ;;  %v3083_v46 = vld [vmem:[%s4346_s5 + $0xb4] sm:$0xf]  ;;  %v800_v35 = vmax.f32 %v646_v1, 0.0 }
 0x18e   : > { %1343 = vmatmul.bf16.gmra.mxu1 %v3630_v47  ;;  %v2895_v47 = vld [vmem:[%s4346_s5 + $0xb8] sm:$0xf0]  ;;  %v801_v12 = vmax.f32 %v735_v10, 0.0 }
 0x18f   : > { %v1162_v0 = vadd.f32 %v1161_v63, %v1073_v62  ;;  %v2898_v18 = vor.u32 %v3083_v46, %v2895_v47 }
 0x191   : > { %1959 = vmatpush.bf16.msra.mxu1 %v2898_v18  ;;  %v1414_v21 = vmax.f32 %v1162_v0, 0.0 }
 0x192   : > { %v647_v11 = vpop.f32.mrf.mxu0 }
 0x193   : > { %v648_v15 = vadd.f32 %v647_v11, %v3470_v16  ;;  %v736_v38 = vpop.f32.mrf.mxu1 }
 0x194   : > { %v737_v19 = vadd.f32 %v736_v38, %v3472_v17  ;;  %v1074_v34 = vpop.f32.mrf.mxu2 }
 0x195   : > { %v802_v23 = vmax.f32 %v648_v15, 0.0  ;;  %v1075_v24 = vadd.f32 %v1074_v34, %v3686_v36  ;;  %v1163_v25 = vpop.f32.mrf.mxu3 }
 0x196   : > { %v803_v13 = vmax.f32 %v737_v19, 0.0 }
 0x197   : > { %v1164_v28 = vadd.f32 %v1163_v25, %v1075_v24  ;;  %v3849_v29 = vpack.c.bf16 %v802_v23, %v800_v35  ;;  %v3065_v24 = vld [vmem:[%s4346_s5 + $0x24] sm:$0xf] }
 0x198   : > { %v3851_v39 = vpack.c.bf16 %v803_v13, %v801_v12  ;;  %v3081_v13 = vld [vmem:[%s4346_s5 + $0xa4] sm:$0xf] }
 0x199   : > { %v1416_v40 = vmax.f32 %v1164_v28, 0.0  ;;  %1116 = vmatmul.bf16.gmra.mxu2 %v3849_v29 }
 0x19a   : > { %1205 = vmatmul.bf16.gmra.mxu3 %v3851_v39  ;;  %v650_v41 = vpop.f32.mrf.mxu0 }
 0x19b   : > { %v739_v42 = vpop.f32.mrf.mxu1  ;;  %v3858_v43 = vpack.c.bf16 %v1416_v40, %v1414_v21  ;;  %v651_v53 = vadd.f32 %v650_v41, %v3470_v16 }
 0x19c   : > { %v1077_v44 = vpop.f32.mrf.mxu2  ;;  %v740_v54 = vadd.f32 %v739_v42, %v3472_v17 }
 0x19d   : > { %v1078_v45 = vadd.f32 %v1077_v44, %v3686_v36  ;;  %v1166_v48 = vpop.f32.mrf.mxu3  ;;  %1259 = vmatmul.bf16.gmra.mxu0 %v3651_v7  ;;  %v804_v7 = vmax.f32 %v651_v53, 0.0 }
 0x19e   : > { %1348 = vmatmul.bf16.gmra.mxu1 %v3653_v8  ;;  %v805_v2 = vmax.f32 %v740_v54, 0.0 }
 0x19f   : > { %v1167_v49 = vadd.f32 %v1166_v48, %v1078_v45 }
 0x1a1   : > { %v1418_v46 = vmax.f32 %v1167_v49, 0.0 }
 0x1a2   : > { %v652_v57 = vpop.f32.mrf.mxu0 }
 0x1a3   : > { %v653_v55 = vadd.f32 %v652_v57, %v3470_v16  ;;  %v741_v56 = vpop.f32.mrf.mxu1  ;;  %v3099_v57 = vld [vmem:[%s4348_s7 + $0x30] sm:$0xff] }
 0x1a4   : > { %v742_v62 = vadd.f32 %v741_v56, %v3472_v17  ;;  %v1079_v63 = vpop.f32.mrf.mxu2  ;;  %v3878_v17 = vperm.slane %v3678_v31, 1  ;;  %v2823_v31 = vld [vmem:[%s4346_s5 + $0x28] sm:$0xf0]  ;;  %2273 = vmatpush.bf16.msra.mxu2 %v3099_v57 }
 0x1a5   : > { %v806_v0 = vmax.f32 %v653_v55, 0.0  ;;  %v1080_v8 = vadd.f32 %v1079_v63, %v3686_v36  ;;  %v1168_v1 = vpop.f32.mrf.mxu3  ;;  %v2826_v12 = vor.u32 %v3065_v24, %v2823_v31 }
 0x1a6   : > { %v807_v3 = vmax.f32 %v742_v62, 0.0 }
 0x1a7   : > { %v1169_v10 = vadd.f32 %v1168_v1, %v1080_v8  ;;  %v3871_v11 = vpack.c.bf16 %v806_v0, %v804_v7  ;;  %1871 = vmatpush.bf16.msra.mxu0 %v2826_v12 }
 0x1a8   : > { %v3873_v37 = vpack.c.bf16 %v807_v3, %v805_v2  ;;  %v3107_v2 = vld [vmem:[%s4348_s7 + $0x70] sm:$0xff] }
 0x1a9   : > { %v1420_v47 = vmax.f32 %v1169_v10, 0.0  ;;  %1121 = vmatmul.bf16.gmra.mxu2 %v3871_v11  ;;  %2362 = vmatpush.bf16.msra.mxu3 %v3107_v2  ;;  %v3098_v2 = vld [vmem:[%s4348_s7 + $0x28] sm:$0xff] }
 0x1aa   : > { %1210 = vmatmul.bf16.gmra.mxu3 %v3873_v37  ;;  %v1225_v16 = vpop.f32.mrf.mxu0  ;;  %2274 = vmatpush.bf16.msra.mxu2 %v3098_v2 }
 0x1ab   : > { %v1314_v15 = vpop.f32.mrf.mxu1  ;;  %v3880_v38 = vpack.c.bf16 %v1420_v47, %v1418_v46  ;;  %v1226_v35 = vadd.f32 %v1225_v16, %v3878_v17 }
 0x1ac   : > { %v1082_v18 = vpop.f32.mrf.mxu2 }
 0x1ad   : > { %v1083_v19 = vadd.f32 %v1082_v18, %v3686_v36  ;;  %v1171_v34 = vpop.f32.mrf.mxu3  ;;  %1264 = vmatmul.bf16.gmra.mxu0 %v3680_v32  ;;  %v2887_v32 = vld [vmem:[%s4346_s5 + $0xa8] sm:$0xf0] }
 0x1ae   : > { %1353 = vmatmul.bf16.gmra.mxu1 %v3682_v33  ;;  %v1315_v33 = vadd.f32 %v1314_v15, %v1226_v35  ;;  %v2890_v40 = vor.u32 %v3081_v13, %v2887_v32 }
 0x1af   : > { %v1172_v23 = vadd.f32 %v1171_v34, %v1083_v19 }
 0x1b0   : > { %1960 = vmatpush.bf16.msra.mxu1 %v2890_v40  ;;  %v1395_v45 = vmax.f32 %v1315_v33, 0.0  ;;  %v3063_v40 = vld [vmem:[%s4346_s5 + $0x14] sm:$0xf] }
 0x1b1   : > { %v1422_v52 = vmax.f32 %v1172_v23, 0.0 }
 0x1b2   : > { %v1227_v25 = vpop.f32.mrf.mxu0 }
 0x1b3   : > { %v1228_v28 = vadd.f32 %v1227_v25, %v3878_v17  ;;  %v1316_v21 = vpop.f32.mrf.mxu1 }
 0x1b4   : > { %v1084_v22 = vpop.f32.mrf.mxu2 }
 0x1b5   : > { %v1317_v41 = vadd.f32 %v1316_v21, %v1228_v28  ;;  %v1085_v42 = vadd.f32 %v1084_v22, %v3686_v36  ;;  %v1173_v44 = vpop.f32.mrf.mxu3  ;;  %v2815_v22 = vld [vmem:[%s4346_s5 + $0x18] sm:$0xf0] }
 0x1b7   : > { %v1397_v48 = vmax.f32 %v1317_v41, 0.0  ;;  %v1174_v49 = vadd.f32 %v1173_v44, %v1085_v42  ;;  %v2818_v42 = vor.u32 %v3063_v40, %v2815_v22  ;;  %v3079_v44 = vld [vmem:[%s4346_s5 + $0x94] sm:$0xf] }
 0x1b9   : > { %v3900_v53 = vpack.c.bf16 %v1397_v48, %v1395_v45  ;;  %v1424_v54 = vmax.f32 %v1174_v49, 0.0  ;;  %1696 = vmatmul.bf16.vlgmr.msrb.gmra.mxu2 %v3715_v14  ;;  %1872 = vmatpush.bf16.msra.mxu0 %v2818_v42 }
 0x1ba   : > { %v1230_v55 = vpop.f32.mrf.mxu0 }
 0x1bb   : > { %v1319_v56 = vpop.f32.mrf.mxu1  ;;  %1785 = vmatmul.bf16.vlgmr.msrb.gmra.mxu3 %v3900_v53  ;;  %v3907_v62 = vpack.c.bf16 %v1424_v54, %v1422_v52  ;;  %v1231_v8 = vadd.f32 %v1230_v55, %v3878_v17 }
 0x1bc   : > { %v1087_v63 = vpop.f32.mrf.mxu2 }
 0x1bd   : > { %v1088_v7 = vadd.f32 %v1087_v63, %v3686_v36  ;;  %v1176_v0 = vpop.f32.mrf.mxu3  ;;  %1269 = vmatmul.bf16.gmra.mxu0 %v3709_v5  ;;  %v1320_v10 = vadd.f32 %v1319_v56, %v1231_v8 }
 0x1be   : > { %1358 = vmatmul.bf16.gmra.mxu1 %v3711_v6 }
 0x1bf   : > { %v1177_v1 = vadd.f32 %v1176_v0, %v1088_v7  ;;  %v1399_v19 = vmax.f32 %v1320_v10, 0.0 }
 0x1c1   : > { %v1426_v35 = vmax.f32 %v1177_v1, 0.0 }
 0x1c2   : > { %v1232_v3 = vpop.f32.mrf.mxu0 }
 0x1c3   : > { %v1233_v46 = vadd.f32 %v1232_v3, %v3878_v17  ;;  %v1321_v47 = vpop.f32.mrf.mxu1 }
 0x1c4   : > { %v1089_v16 = vpop.f32.mrf.mxu2 }
 0x1c5   : > { %v1322_v15 = vadd.f32 %v1321_v47, %v1233_v46  ;;  %v1090_v18 = vadd.f32 %v1089_v16, %v3686_v36  ;;  %v1178_v5 = vpop.f32.mrf.mxu3 }
 0x1c7   : > { %v1401_v6 = vmax.f32 %v1322_v15, 0.0  ;;  %v1179_v34 = vadd.f32 %v1178_v5, %v1090_v18 }
 0x1c9   : > { %v1428_v23 = vmax.f32 %v1179_v34, 0.0  ;;  %1701 = vmatmul.bf16.gmra.mxu2 %v3749_v59  ;;  %v3919_v24 = vpack.c.bf16 %v1401_v6, %v1399_v19  ;;  %v3106_v19 = vld [vmem:[%s4348_s7 + $0x68] sm:$0xff] }
 0x1ca   : > { %v1235_v31 = vpop.f32.mrf.mxu0  ;;  %2363 = vmatpush.bf16.msra.mxu3 %v3106_v19  ;;  %v3097_v19 = vld [vmem:[%s4348_s7 + $0x20] sm:$0xff] }
 0x1cb   : > { %v1324_v25 = vpop.f32.mrf.mxu1  ;;  %1790 = vmatmul.bf16.gmra.mxu3 %v3919_v24  ;;  %v3922_v12 = vpack.c.bf16 %v1428_v23, %v1426_v35  ;;  %v1236_v28 = vadd.f32 %v1235_v31, %v3878_v17  ;;  %2275 = vmatpush.bf16.msra.mxu2 %v3097_v19 }
 0x1cc   : > { %v1092_v13 = vpop.f32.mrf.mxu2 }
 0x1cd   : > { %v1093_v32 = vadd.f32 %v1092_v13, %v3686_v36  ;;  %v1181_v33 = vpop.f32.mrf.mxu3  ;;  %1274 = vmatmul.bf16.gmra.mxu0 %v3737_v50  ;;  %v2879_v50 = vld [vmem:[%s4346_s5 + $0x98] sm:$0xf0] }
 0x1ce   : > { %1363 = vmatmul.bf16.gmra.mxu1 %v3739_v51  ;;  %v1325_v51 = vadd.f32 %v1324_v25, %v1236_v28  ;;  %v2882_v49 = vor.u32 %v3079_v44, %v2879_v50 }
 0x1cf   : > { %v1182_v21 = vadd.f32 %v1181_v33, %v1093_v32 }
 0x1d0   : > { %1961 = vmatpush.bf16.msra.mxu1 %v2882_v49  ;;  %v1403_v56 = vmax.f32 %v1325_v51, 0.0  ;;  %v3061_v49 = vld [vmem:[%s4346_s5 + $0x4] sm:$0xf] }
 0x1d1   : > { %v1430_v0 = vmax.f32 %v1182_v21, 0.0 }
 0x1d2   : > { %v1237_v41 = vpop.f32.mrf.mxu0 }
 0x1d3   : > { %v1238_v45 = vadd.f32 %v1237_v41, %v3878_v17  ;;  %v1326_v48 = vpop.f32.mrf.mxu1 }
 0x1d4   : > { %v1094_v52 = vpop.f32.mrf.mxu2 }
 0x1d5   : > { %v1327_v54 = vadd.f32 %v1326_v48, %v1238_v45  ;;  %v1095_v57 = vadd.f32 %v1094_v52, %v3686_v36  ;;  %v1183_v55 = vpop.f32.mrf.mxu3  ;;  %v2807_v52 = vld [vmem:[%s4346_s5 + $0x8] sm:$0xf0] }
 0x1d7   : > { %v1405_v63 = vmax.f32 %v1327_v54, 0.0  ;;  %v1184_v7 = vadd.f32 %v1183_v55, %v1095_v57  ;;  %v2810_v57 = vor.u32 %v3061_v49, %v2807_v52  ;;  %v3077_v55 = vld [vmem:[%s4346_s5 + $0x84] sm:$0xf] }
 0x1d9   : > { %v1432_v8 = vmax.f32 %v1184_v7, 0.0  ;;  %1706 = vmatmul.bf16.gmra.mxu2 %v3771_v30  ;;  %v3943_v1 = vpack.c.bf16 %v1405_v63, %v1403_v56  ;;  %1873 = vmatpush.bf16.msra.mxu0 %v2810_v57 }
 0x1da   : > { %v1240_v3 = vpop.f32.mrf.mxu0 }
 0x1db   : > { %v1329_v10 = vpop.f32.mrf.mxu1  ;;  %1795 = vmatmul.bf16.gmra.mxu3 %v3943_v1  ;;  %v3949_v46 = vpack.c.bf16 %v1432_v8, %v1430_v0  ;;  %v1241_v18 = vadd.f32 %v1240_v3, %v3878_v17 }
 0x1dc   : > { %v1097_v47 = vpop.f32.mrf.mxu2 }
 0x1dd   : > { %v1098_v16 = vadd.f32 %v1097_v47, %v3686_v36  ;;  %v1186_v15 = vpop.f32.mrf.mxu3  ;;  %1279 = vmatmul.bf16.gmra.mxu0 %v3765_v26  ;;  %v1330_v34 = vadd.f32 %v1329_v10, %v1241_v18 }
 0x1de   : > { %1368 = vmatmul.bf16.gmra.mxu1 %v3767_v27 }
 0x1df   : > { %v1187_v5 = vadd.f32 %v1186_v15, %v1098_v16  ;;  %v1407_v32 = vmax.f32 %v1330_v34, 0.0 }
 0x1e1   : > { %v1434_v28 = vmax.f32 %v1187_v5, 0.0 }
 0x1e2   : > { %v1242_v6 = vpop.f32.mrf.mxu0 }
 0x1e3   : > { %v1243_v35 = vadd.f32 %v1242_v6, %v3878_v17  ;;  %v1331_v23 = vpop.f32.mrf.mxu1 }
 0x1e4   : > { %v1099_v31 = vpop.f32.mrf.mxu2 }
 0x1e5   : > { %v1332_v25 = vadd.f32 %v1331_v23, %v1243_v35  ;;  %v1100_v13 = vadd.f32 %v1099_v31, %v3686_v36  ;;  %v1188_v26 = vpop.f32.mrf.mxu3 }
 0x1e7   : > { %v1409_v27 = vmax.f32 %v1332_v25, 0.0  ;;  %v1189_v33 = vadd.f32 %v1188_v26, %v1100_v13 }
 0x1e9   : > { %v1436_v21 = vmax.f32 %v1189_v33, 0.0  ;;  %1711 = vmatmul.bf16.gmra.mxu2 %v3805_v20  ;;  %v3961_v40 = vpack.c.bf16 %v1409_v27, %v1407_v32  ;;  %v3105_v32 = vld [vmem:[%s4348_s7 + $0x60] sm:$0xff] }
 0x1ea   : > { %v1245_v22 = vpop.f32.mrf.mxu0  ;;  %2364 = vmatpush.bf16.msra.mxu3 %v3105_v32 }
 0x1eb   : > { %v1334_v41 = vpop.f32.mrf.mxu1  ;;  %1800 = vmatmul.bf16.gmra.mxu3 %v3961_v40  ;;  %v3964_v42 = vpack.c.bf16 %v1436_v21, %v1434_v28  ;;  %v1246_v45 = vadd.f32 %v1245_v22, %v3878_v17 }
 0x1ec   : > { %v1102_v44 = vpop.f32.mrf.mxu2 }
 0x1ed   : > { %v1103_v50 = vadd.f32 %v1102_v44, %v3686_v36  ;;  %v1191_v51 = vpop.f32.mrf.mxu3  ;;  %1284 = vmatmul.bf16.gmra.mxu0 %v3793_v4  ;;  %v2871_v4 = vld [vmem:[%s4346_s5 + $0x88] sm:$0xf0] }
 0x1ee   : > { %1373 = vmatmul.bf16.gmra.mxu1 %v3795_v9  ;;  %v1335_v9 = vadd.f32 %v1334_v41, %v1246_v45  ;;  %v2874_v7 = vor.u32 %v3077_v55, %v2871_v4 }
 0x1ef   : > { %v1192_v48 = vadd.f32 %v1191_v51, %v1103_v50 }
 0x1f0   : > { %1962 = vmatpush.bf16.msra.mxu1 %v2874_v7  ;;  %v1411_v10 = vmax.f32 %v1335_v9, 0.0 }
 0x1f1   : > { %v1438_v15 = vmax.f32 %v1192_v48, 0.0 }
 0x1f2   : > { %v1247_v54 = vpop.f32.mrf.mxu0 }
 0x1f3   : > { %v1248_v56 = vadd.f32 %v1247_v54, %v3878_v17  ;;  %v1336_v63 = vpop.f32.mrf.mxu1 }
 0x1f4   : > { %v1104_v0 = vpop.f32.mrf.mxu2 }
 0x1f5   : > { %v1337_v8 = vadd.f32 %v1336_v63, %v1248_v56  ;;  %v1105_v2 = vadd.f32 %v1104_v0, %v3686_v36  ;;  %v1193_v3 = vpop.f32.mrf.mxu3 }
 0x1f7   : > { %v1413_v47 = vmax.f32 %v1337_v8, 0.0  ;;  %v1194_v16 = vadd.f32 %v1193_v3, %v1105_v2 }
 0x1f9   : > { %v1440_v18 = vmax.f32 %v1194_v16, 0.0  ;;  %1716 = vmatmul.bf16.gmra.mxu2 %v3827_v58  ;;  %v3985_v5 = vpack.c.bf16 %v1413_v47, %v1411_v10 }
 0x1fa   : > { %v1250_v6 = vpop.f32.mrf.mxu0 }
 0x1fb   : > { %v1339_v34 = vpop.f32.mrf.mxu1  ;;  %1805 = vmatmul.bf16.gmra.mxu3 %v3985_v5  ;;  %v3991_v35 = vpack.c.bf16 %v1440_v18, %v1438_v15  ;;  %v1251_v13 = vadd.f32 %v1250_v6, %v3878_v17 }
 0x1fc   : > { %v1107_v23 = vpop.f32.mrf.mxu2 }
 0x1fd   : > { %v1108_v31 = vadd.f32 %v1107_v23, %v3686_v36  ;;  %v1196_v25 = vpop.f32.mrf.mxu3  ;;  %1289 = vmatmul.bf16.gmra.mxu0 %v3821_v60  ;;  %v1340_v33 = vadd.f32 %v1339_v34, %v1251_v13  ;;  %v3096_v34 = vld [vmem:[%s4348_s7 + $0x18] sm:$0xff] }
 0x1fe   : > { %1378 = vmatmul.bf16.gmra.mxu1 %v3823_v61  ;;  %2276 = vmatpush.bf16.msra.mxu2 %v3096_v34 }
 0x1ff   : > { %v1197_v26 = vadd.f32 %v1196_v25, %v1108_v31  ;;  %v1415_v50 = vmax.f32 %v1340_v33, 0.0 }
 0x201   : > { %v1442_v45 = vmax.f32 %v1197_v26, 0.0 }
 0x202   : > { %v1252_v27 = vpop.f32.mrf.mxu0 }
 0x203   : > { %v1253_v28 = vadd.f32 %v1252_v27, %v3878_v17  ;;  %v1341_v21 = vpop.f32.mrf.mxu1 }
 0x204   : > { %v1109_v22 = vpop.f32.mrf.mxu2 }
 0x205   : > { %v1342_v41 = vadd.f32 %v1341_v21, %v1253_v28  ;;  %v1110_v44 = vadd.f32 %v1109_v22, %v3686_v36  ;;  %v1198_v60 = vpop.f32.mrf.mxu3  ;;  %v3104_v28 = vld [vmem:[%s4348_s7 + $0x58] sm:$0xff] }
 0x206   : > { %2365 = vmatpush.bf16.msra.mxu3 %v3104_v28 }
 0x207   : > { %v1417_v61 = vmax.f32 %v1342_v41, 0.0  ;;  %v1199_v51 = vadd.f32 %v1198_v60, %v1110_v44 }
 0x209   : > { %v1444_v48 = vmax.f32 %v1199_v51, 0.0  ;;  %1721 = vmatmul.bf16.gmra.mxu2 %v3858_v43  ;;  %v4003_v49 = vpack.c.bf16 %v1417_v61, %v1415_v50 }
 0x20a   : > { %v1255_v52 = vpop.f32.mrf.mxu0 }
 0x20b   : > { %v1344_v54 = vpop.f32.mrf.mxu1  ;;  %1810 = vmatmul.bf16.gmra.mxu3 %v4003_v49  ;;  %v4006_v57 = vpack.c.bf16 %v1444_v48, %v1442_v45  ;;  %v1256_v56 = vadd.f32 %v1255_v52, %v3878_v17 }
 0x20c   : > { %v1112_v55 = vpop.f32.mrf.mxu2 }
 0x20d   : > { %v1113_v4 = vadd.f32 %v1112_v55, %v3686_v36  ;;  %v1201_v9 = vpop.f32.mrf.mxu3  ;;  %1294 = vmatmul.bf16.gmra.mxu0 %v3849_v29  ;;  %v1345_v0 = vadd.f32 %v1344_v54, %v1256_v56 }
 0x20e   : > { %1383 = vmatmul.bf16.gmra.mxu1 %v3851_v39 }
 0x20f   : > { %v1202_v63 = vadd.f32 %v1201_v9, %v1113_v4  ;;  %v1419_v15 = vmax.f32 %v1345_v0, 0.0 }
 0x211   : > { %v1446_v6 = vmax.f32 %v1202_v63, 0.0 }
 0x212   : > { %v1257_v7 = vpop.f32.mrf.mxu0 }
 0x213   : > { %v1258_v8 = vadd.f32 %v1257_v7, %v3878_v17  ;;  %v1346_v2 = vpop.f32.mrf.mxu1 }
 0x214   : > { %v1114_v3 = vpop.f32.mrf.mxu2 }
 0x215   : > { %v1347_v10 = vadd.f32 %v1346_v2, %v1258_v8  ;;  %v1115_v47 = vadd.f32 %v1114_v3, %v3686_v36  ;;  %v1203_v16 = vpop.f32.mrf.mxu3 }
 0x217   : > { %v1421_v18 = vmax.f32 %v1347_v10, 0.0  ;;  %v1204_v19 = vadd.f32 %v1203_v16, %v1115_v47 }
 0x219   : > { %v1448_v29 = vmax.f32 %v1204_v19, 0.0  ;;  %1726 = vmatmul.bf16.gmra.mxu2 %v3880_v38  ;;  %v4015_v39 = vpack.c.bf16 %v1421_v18, %v1419_v15 }
 0x21a   : > { %v1260_v23 = vpop.f32.mrf.mxu0 }
 0x21b   : > { %v1349_v31 = vpop.f32.mrf.mxu1  ;;  %1815 = vmatmul.bf16.gmra.mxu3 %v4015_v39  ;;  %v4021_v25 = vpack.c.bf16 %v1448_v29, %v1446_v6  ;;  %v1261_v27 = vadd.f32 %v1260_v23, %v3878_v17  ;;  %v4047_v6 = vld [vmem:[%s4347_s6] sm:$0x3] }
 0x21c   : > { %v1117_v13 = vpop.f32.mrf.mxu2 }
 0x21d   : > { %v1118_v26 = vadd.f32 %v1117_v13, %v3686_v36  ;;  %v1206_v32 = vpop.f32.mrf.mxu3  ;;  %1299 = vmatmul.bf16.gmra.mxu0 %v3871_v11  ;;  %v1350_v22 = vadd.f32 %v1349_v31, %v1261_v27  ;;  %v4053_v13 = vperm.slane %v4047_v6, 0 }
 0x21e   : > { %1388 = vmatmul.bf16.gmra.mxu1 %v3873_v37 }
 0x21f   : > { %v1207_v33 = vadd.f32 %v1206_v32, %v1118_v26  ;;  %v1423_v51 = vmax.f32 %v1350_v22, 0.0 }
 0x221   : > { %v1450_v48 = vmax.f32 %v1207_v33, 0.0 }
 0x222   : > { %v1262_v21 = vpop.f32.mrf.mxu0 }
 0x223   : > { %v1263_v41 = vadd.f32 %v1262_v21, %v3878_v17  ;;  %v1351_v44 = vpop.f32.mrf.mxu1 }
 0x224   : > { %v1119_v60 = vpop.f32.mrf.mxu2 }
 0x225   : > { %v1352_v50 = vadd.f32 %v1351_v44, %v1263_v41  ;;  %v1120_v61 = vadd.f32 %v1119_v60, %v3686_v36  ;;  %v1208_v11 = vpop.f32.mrf.mxu3  ;;  %v3103_v44 = vld [vmem:[%s4348_s7 + $0x50] sm:$0xff] }
 0x226   : > { %2366 = vmatpush.bf16.msra.mxu3 %v3103_v44 }
 0x227   : > { %v1425_v37 = vmax.f32 %v1352_v50, 0.0  ;;  %v1209_v45 = vadd.f32 %v1208_v11, %v1120_v61 }
 0x229   : > { %v1452_v52 = vmax.f32 %v1209_v45, 0.0  ;;  %1731 = vmatmul.bf16.gmra.mxu2 %v3907_v62  ;;  %v4033_v54 = vpack.c.bf16 %v1425_v37, %v1423_v51 }
 0x22a   : > { %v1265_v55 = vpop.f32.mrf.mxu0 }
 0x22b   : > { %v1354_v4 = vpop.f32.mrf.mxu1  ;;  %1820 = vmatmul.bf16.gmra.mxu3 %v4033_v54  ;;  %v4036_v9 = vpack.c.bf16 %v1452_v52, %v1450_v48  ;;  %v1266_v0 = vadd.f32 %v1265_v55, %v3878_v17 }
 0x22c   : > { %v1122_v56 = vpop.f32.mrf.mxu2 }
 0x22d   : > { %v1123_v63 = vadd.f32 %v1122_v56, %v3686_v36  ;;  %v1211_v7 = vpop.f32.mrf.mxu3  ;;  %1874 = vmatmul.bf16.vlgmr.msra.gmra.mxu0 %v3715_v14  ;;  %v1355_v3 = vadd.f32 %v1354_v4, %v1266_v0 }
 0x22e   : > { %1963 = vmatmul.bf16.vlgmr.msra.gmra.mxu1 %v3900_v53 }
 0x22f   : > { %v1212_v8 = vadd.f32 %v1211_v7, %v1123_v63  ;;  %v1427_v14 = vmax.f32 %v1355_v3, 0.0 }
 0x231   : > { %v1454_v34 = vmax.f32 %v1212_v8, 0.0 }
 0x232   : > { %v1267_v2 = vpop.f32.mrf.mxu0 }
 0x233   : > { %v1268_v10 = vadd.f32 %v1267_v2, %v3878_v17  ;;  %v1356_v47 = vpop.f32.mrf.mxu1 }
 0x234   : > { %v1124_v16 = vpop.f32.mrf.mxu2 }
 0x235   : > { %v1357_v15 = vadd.f32 %v1356_v47, %v1268_v10  ;;  %v1125_v18 = vadd.f32 %v1124_v16, %v3686_v36  ;;  %v1213_v19 = vpop.f32.mrf.mxu3  ;;  %v3095_v36 = vld [vmem:[%s4348_s7 + $0x10] sm:$0xff] }
 0x236   : > { %2277 = vmatpush.bf16.msra.mxu2 %v3095_v36 }
 0x237   : > { %v1429_v53 = vmax.f32 %v1357_v15, 0.0  ;;  %v1214_v29 = vadd.f32 %v1213_v19, %v1125_v18 }
 0x239   : > { %v1456_v23 = vmax.f32 %v1214_v29, 0.0  ;;  %1736 = vmatmul.bf16.gmra.mxu2 %v3922_v12  ;;  %v4050_v31 = vpack.c.bf16 %v1429_v53, %v1427_v14 }
 0x23a   : > { %v1270_v26 = vpop.f32.mrf.mxu0 }
 0x23b   : > { %v1359_v32 = vpop.f32.mrf.mxu1  ;;  %1825 = vmatmul.bf16.gmra.mxu3 %v4050_v31  ;;  %v4059_v27 = vpack.c.bf16 %v1456_v23, %v1454_v34  ;;  %v1271_v22 = vadd.f32 %v1270_v26, %v3878_v17 }
 0x23c   : > { %v1697_v33 = vpop.f32.mrf.mxu2 }
 0x23d   : > { %v1698_v28 = vadd.f32 %v1697_v33, %v4053_v13  ;;  %1879 = vmatmul.bf16.gmra.mxu0 %v3749_v59  ;;  %v1360_v50 = vadd.f32 %v1359_v32, %v1271_v22  ;;  %v3094_v33 = vld [vmem:[%s4348_s7 + $0x8] sm:$0xff] }
 0x23e   : > { %1968 = vmatmul.bf16.gmra.mxu1 %v3919_v24  ;;  %v1786_v21 = vpop.f32.mrf.mxu3  ;;  %2278 = vmatpush.bf16.msra.mxu2 %v3094_v33 }
 0x23f   : > { %v1787_v41 = vadd.f32 %v1786_v21, %v1698_v28  ;;  %v1431_v24 = vmax.f32 %v1360_v50, 0.0 }
 0x241   : > { %v2044_v55 = vmax.f32 %v1787_v41, 0.0 }
 0x242   : > { %v1272_v60 = vpop.f32.mrf.mxu0 }
 0x243   : > { %v1273_v61 = vadd.f32 %v1272_v60, %v3878_v17  ;;  %v1361_v11 = vpop.f32.mrf.mxu1 }
 0x244   : > { %v1699_v51 = vpop.f32.mrf.mxu2 }
 0x245   : > { %v1362_v37 = vadd.f32 %v1361_v11, %v1273_v61  ;;  %v1700_v59 = vadd.f32 %v1699_v51, %v4053_v13  ;;  %v3102_v11 = vld [vmem:[%s4348_s7 + $0x48] sm:$0xff] }
 0x246   : > { %v1788_v45 = vpop.f32.mrf.mxu3  ;;  %2367 = vmatpush.bf16.msra.mxu3 %v3102_v11 }
 0x247   : > { %v1433_v48 = vmax.f32 %v1362_v37, 0.0  ;;  %v1789_v52 = vadd.f32 %v1788_v45, %v1700_v59 }
 0x249   : > { %v2046_v4 = vmax.f32 %v1789_v52, 0.0  ;;  %1741 = vmatmul.bf16.gmra.mxu2 %v3949_v46  ;;  %v4071_v56 = vpack.c.bf16 %v1433_v48, %v1431_v24 }
 0x24a   : > { %v1275_v63 = vpop.f32.mrf.mxu0 }
 0x24b   : > { %v4073_v7 = vpack.c.bf16 %v2046_v4, %v2044_v55  ;;  %v1364_v0 = vpop.f32.mrf.mxu1  ;;  %1830 = vmatmul.bf16.gmra.mxu3 %v4071_v56  ;;  %v1276_v10 = vadd.f32 %v1275_v63, %v3878_v17 }
 0x24c   : > { %v1702_v8 = vpop.f32.mrf.mxu2 }
 0x24d   : > { %v1703_v2 = vadd.f32 %v1702_v8, %v4053_v13  ;;  %1884 = vmatmul.bf16.gmra.mxu0 %v3771_v30  ;;  %v1365_v15 = vadd.f32 %v1364_v0, %v1276_v10 }
 0x24e   : > { %1973 = vmatmul.bf16.gmra.mxu1 %v3943_v1  ;;  %v1791_v3 = vpop.f32.mrf.mxu3 }
 0x24f   : > { %v1792_v47 = vadd.f32 %v1791_v3, %v1703_v2  ;;  %v1435_v23 = vmax.f32 %v1365_v15, 0.0 }
 0x251   : > { %v2048_v30 = vmax.f32 %v1792_v47, 0.0 }
 0x252   : > { %v1277_v16 = vpop.f32.mrf.mxu0 }
 0x253   : > { %v1278_v18 = vadd.f32 %v1277_v16, %v3878_v17  ;;  %v1366_v19 = vpop.f32.mrf.mxu1 }
 0x254   : > { %v1704_v14 = vpop.f32.mrf.mxu2 }
 0x255   : > { %v1367_v53 = vadd.f32 %v1366_v19, %v1278_v18  ;;  %v1705_v29 = vadd.f32 %v1704_v14, %v4053_v13 }
 0x256   : > { %v1793_v34 = vpop.f32.mrf.mxu3 }
 0x257   : > { %v1437_v36 = vmax.f32 %v1367_v53, 0.0  ;;  %v1794_v26 = vadd.f32 %v1793_v34, %v1705_v29 }
 0x259   : > { %v2050_v32 = vmax.f32 %v1794_v26, 0.0  ;;  %1746 = vmatmul.bf16.gmra.mxu2 %v3964_v42  ;;  %v4083_v1 = vpack.c.bf16 %v1437_v36, %v1435_v23 }
 0x25a   : > { %v1280_v28 = vpop.f32.mrf.mxu0 }
 0x25b   : > { %v1369_v21 = vpop.f32.mrf.mxu1  ;;  %1835 = vmatmul.bf16.gmra.mxu3 %v4083_v1  ;;  %v4089_v22 = vpack.c.bf16 %v2050_v32, %v2048_v30  ;;  %v1281_v50 = vadd.f32 %v1280_v28, %v3878_v17 }
 0x25c   : > { %v1707_v41 = vpop.f32.mrf.mxu2 }
 0x25d   : > { %v1708_v44 = vadd.f32 %v1707_v41, %v4053_v13  ;;  %1889 = vmatmul.bf16.gmra.mxu0 %v3805_v20  ;;  %v1370_v37 = vadd.f32 %v1369_v21, %v1281_v50  ;;  %v3093_v41 = vld [vmem:[%s4348_s7] sm:$0xff] }
 0x25e   : > { %1978 = vmatmul.bf16.gmra.mxu1 %v3961_v40  ;;  %v1796_v60 = vpop.f32.mrf.mxu3  ;;  %2279 = vmatpush.bf16.msra.mxu2 %v3093_v41 }
 0x25f   : > { %v1797_v61 = vadd.f32 %v1796_v60, %v1708_v44  ;;  %v1439_v40 = vmax.f32 %v1370_v37, 0.0 }
 0x261   : > { %v2052_v63 = vmax.f32 %v1797_v61, 0.0 }
 0x262   : > { %v1282_v51 = vpop.f32.mrf.mxu0 }
 0x263   : > { %v1283_v59 = vadd.f32 %v1282_v51, %v3878_v17  ;;  %v1371_v45 = vpop.f32.mrf.mxu1 }
 0x264   : > { %v1709_v24 = vpop.f32.mrf.mxu2 }
 0x265   : > { %v1372_v48 = vadd.f32 %v1371_v45, %v1283_v59  ;;  %v1710_v20 = vadd.f32 %v1709_v24, %v4053_v13  ;;  %v3101_v45 = vld [vmem:[%s4348_s7 + $0x40] sm:$0xff] }
 0x266   : > { %v1798_v52 = vpop.f32.mrf.mxu3  ;;  %2368 = vmatpush.bf16.msra.mxu3 %v3101_v45 }
 0x267   : > { %v1441_v55 = vmax.f32 %v1372_v48, 0.0  ;;  %v1799_v4 = vadd.f32 %v1798_v52, %v1710_v20 }
 0x269   : > { %v2054_v0 = vmax.f32 %v1799_v4, 0.0  ;;  %1751 = vmatmul.bf16.gmra.mxu2 %v3991_v35  ;;  %v4101_v8 = vpack.c.bf16 %v1441_v55, %v1439_v40 }
 0x26a   : > { %v1285_v2 = vpop.f32.mrf.mxu0 }
 0x26b   : > { %v1374_v3 = vpop.f32.mrf.mxu1  ;;  %1840 = vmatmul.bf16.gmra.mxu3 %v4101_v8  ;;  %v4104_v10 = vpack.c.bf16 %v2054_v0, %v2052_v63  ;;  %v1286_v18 = vadd.f32 %v1285_v2, %v3878_v17 }
 0x26c   : > { %v1712_v47 = vpop.f32.mrf.mxu2 }
 0x26d   : > { %v1713_v16 = vadd.f32 %v1712_v47, %v4053_v13  ;;  %1894 = vmatmul.bf16.gmra.mxu0 %v3827_v58  ;;  %v1375_v53 = vadd.f32 %v1374_v3, %v1286_v18 }
 0x26e   : > { %1983 = vmatmul.bf16.gmra.mxu1 %v3985_v5  ;;  %v1801_v15 = vpop.f32.mrf.mxu3 }
 0x26f   : > { %v1802_v19 = vadd.f32 %v1801_v15, %v1713_v16  ;;  %v1443_v32 = vmax.f32 %v1375_v53, 0.0 }
 0x271   : > { %v2056_v58 = vmax.f32 %v1802_v19, 0.0 }
 0x272   : > { %v1287_v14 = vpop.f32.mrf.mxu0 }
 0x273   : > { %v1288_v29 = vadd.f32 %v1287_v14, %v3878_v17  ;;  %v1376_v34 = vpop.f32.mrf.mxu1 }
 0x274   : > { %v1714_v23 = vpop.f32.mrf.mxu2 }
 0x275   : > { %v1377_v36 = vadd.f32 %v1376_v34, %v1288_v29  ;;  %v1715_v26 = vadd.f32 %v1714_v23, %v4053_v13 }
 0x276   : > { %v1803_v30 = vpop.f32.mrf.mxu3 }
 0x277   : > { %v1445_v33 = vmax.f32 %v1377_v36, 0.0  ;;  %v1804_v28 = vadd.f32 %v1803_v30, %v1715_v26 }
 0x279   : > { %v2058_v21 = vmax.f32 %v1804_v28, 0.0  ;;  %1756 = vmatmul.bf16.gmra.mxu2 %v4006_v57  ;;  %v4113_v5 = vpack.c.bf16 %v1445_v33, %v1443_v32 }
 0x27a   : > { %v1290_v44 = vpop.f32.mrf.mxu0 }
 0x27b   : > { %v1379_v60 = vpop.f32.mrf.mxu1  ;;  %1845 = vmatmul.bf16.gmra.mxu3 %v4113_v5  ;;  %v4119_v50 = vpack.c.bf16 %v2058_v21, %v2056_v58  ;;  %v1291_v37 = vadd.f32 %v1290_v44, %v3878_v17 }
 0x27c   : > { %v1717_v61 = vpop.f32.mrf.mxu2 }
 0x27d   : > { %v1718_v11 = vadd.f32 %v1717_v61, %v4053_v13  ;;  %1899 = vmatmul.bf16.gmra.mxu0 %v3858_v43  ;;  %v1380_v48 = vadd.f32 %v1379_v60, %v1291_v37 }
 0x27e   : > { %1988 = vmatmul.bf16.gmra.mxu1 %v4003_v49  ;;  %v1806_v51 = vpop.f32.mrf.mxu3 }
 0x27f   : > { %v1807_v59 = vadd.f32 %v1806_v51, %v1718_v11  ;;  %v1447_v49 = vmax.f32 %v1380_v48, 0.0 }
 0x281   : > { %v2060_v2 = vmax.f32 %v1807_v59, 0.0 }
 0x282   : > { %v1292_v24 = vpop.f32.mrf.mxu0 }
 0x283   : > { %v1293_v20 = vadd.f32 %v1292_v24, %v3878_v17  ;;  %v1381_v52 = vpop.f32.mrf.mxu1 }
 0x284   : > { %v1719_v40 = vpop.f32.mrf.mxu2 }
 0x285   : > { %v1382_v55 = vadd.f32 %v1381_v52, %v1293_v20  ;;  %v1720_v43 = vadd.f32 %v1719_v40, %v4053_v13 }
 0x286   : > { %v1808_v4 = vpop.f32.mrf.mxu3 }
 0x287   : > { %v1449_v63 = vmax.f32 %v1382_v55, 0.0  ;;  %v1809_v0 = vadd.f32 %v1808_v4, %v1720_v43 }
 0x289   : > { %v2062_v3 = vmax.f32 %v1809_v0, 0.0  ;;  %1761 = vmatmul.bf16.gmra.mxu2 %v4021_v25  ;;  %v4131_v47 = vpack.c.bf16 %v1449_v63, %v1447_v49 }
 0x28a   : > { %v1295_v16 = vpop.f32.mrf.mxu0 }
 0x28b   : > { %v1384_v15 = vpop.f32.mrf.mxu1  ;;  %1850 = vmatmul.bf16.gmra.mxu3 %v4131_v47  ;;  %v4134_v18 = vpack.c.bf16 %v2062_v3, %v2060_v2  ;;  %v1296_v29 = vadd.f32 %v1295_v16, %v3878_v17 }
 0x28c   : > { %v1722_v19 = vpop.f32.mrf.mxu2 }
 0x28d   : > { %v1723_v14 = vadd.f32 %v1722_v19, %v4053_v13  ;;  %1904 = vmatmul.bf16.gmra.mxu0 %v3880_v38  ;;  %v1385_v36 = vadd.f32 %v1384_v15, %v1296_v29  ;;  %v4158_v19 = vperm.slane %v4047_v6, 1 }
 0x28e   : > { %1993 = vmatmul.bf16.gmra.mxu1 %v4015_v39  ;;  %v1811_v53 = vpop.f32.mrf.mxu3 }
 0x28f   : > { %v1812_v34 = vadd.f32 %v1811_v53, %v1723_v14  ;;  %v1451_v21 = vmax.f32 %v1385_v36, 0.0 }
 0x291   : > { %v2064_v38 = vmax.f32 %v1812_v34, 0.0 }
 0x292   : > { %v1297_v23 = vpop.f32.mrf.mxu0 }
 0x293   : > { %v1298_v26 = vadd.f32 %v1297_v23, %v3878_v17  ;;  %v1386_v30 = vpop.f32.mrf.mxu1 }
 0x294   : > { %v1724_v32 = vpop.f32.mrf.mxu2 }
 0x295   : > { %v1387_v33 = vadd.f32 %v1386_v30, %v1298_v26  ;;  %v1725_v28 = vadd.f32 %v1724_v32, %v4053_v13 }
 0x296   : > { %v1813_v58 = vpop.f32.mrf.mxu3 }
 0x297   : > { %v1453_v41 = vmax.f32 %v1387_v33, 0.0  ;;  %v1814_v44 = vadd.f32 %v1813_v58, %v1725_v28 }
 0x299   : > { %v2066_v60 = vmax.f32 %v1814_v44, 0.0  ;;  %1766 = vmatmul.bf16.gmra.mxu2 %v4036_v9  ;;  %v4143_v39 = vpack.c.bf16 %v1453_v41, %v1451_v21 }
 0x29a   : > { %v1300_v61 = vpop.f32.mrf.mxu0 }
 0x29b   : > { %v1389_v11 = vpop.f32.mrf.mxu1  ;;  %1855 = vmatmul.bf16.gmra.mxu3 %v4143_v39  ;;  %v4146_v51 = vpack.c.bf16 %v2066_v60, %v2064_v38  ;;  %v1301_v24 = vadd.f32 %v1300_v61, %v3878_v17 }
 0x29c   : > { %v1727_v37 = vpop.f32.mrf.mxu2 }
 0x29d   : > { %v1728_v59 = vadd.f32 %v1727_v37, %v4053_v13  ;;  %1909 = vmatmul.bf16.gmra.mxu0 %v3907_v62  ;;  %v1390_v52 = vadd.f32 %v1389_v11, %v1301_v24 }
 0x29e   : > { %1998 = vmatmul.bf16.gmra.mxu1 %v4033_v54  ;;  %v1816_v45 = vpop.f32.mrf.mxu3 }
 0x29f   : > { %v1817_v48 = vadd.f32 %v1816_v45, %v1728_v59  ;;  %v1455_v0 = vmax.f32 %v1390_v52, 0.0 }
 0x2a1   : > { %v2068_v62 = vmax.f32 %v1817_v48, 0.0 }
 0x2a2   : > { %v1302_v20 = vpop.f32.mrf.mxu0 }
 0x2a3   : > { %v1303_v40 = vadd.f32 %v1302_v20, %v3878_v17  ;;  %v1391_v55 = vpop.f32.mrf.mxu1 }
 0x2a4   : > { %v1729_v43 = vpop.f32.mrf.mxu2 }
 0x2a5   : > { %v1392_v4 = vadd.f32 %v1391_v55, %v1303_v40  ;;  %v1730_v49 = vadd.f32 %v1729_v43, %v4053_v13 }
 0x2a6   : > { %v1818_v63 = vpop.f32.mrf.mxu3 }
 0x2a7   : > { %v1457_v2 = vmax.f32 %v1392_v4, 0.0  ;;  %v1819_v3 = vadd.f32 %v1818_v63, %v1730_v49 }
 0x2a9   : > { %v2070_v16 = vmax.f32 %v1819_v3, 0.0  ;;  %1771 = vmatmul.bf16.gmra.mxu2 %v4059_v27  ;;  %v4155_v54 = vpack.c.bf16 %v1457_v2, %v1455_v0 }
 0x2aa   : > { %v1875_v15 = vpop.f32.mrf.mxu0 }
 0x2ab   : > { %v1964_v17 = vpop.f32.mrf.mxu1  ;;  %1860 = vmatmul.bf16.gmra.mxu3 %v4155_v54  ;;  %v4161_v14 = vpack.c.bf16 %v2070_v16, %v2068_v62  ;;  %v1876_v23 = vadd.f32 %v1875_v15, %v4158_v19 }
 0x2ac   : > { %v1732_v53 = vpop.f32.mrf.mxu2 }
 0x2ad   : > { %v1733_v29 = vadd.f32 %v1732_v53, %v4053_v13  ;;  %1914 = vmatmul.bf16.gmra.mxu0 %v3922_v12  ;;  %v1965_v30 = vadd.f32 %v1964_v17, %v1876_v23 }
 0x2ae   : > { %2003 = vmatmul.bf16.gmra.mxu1 %v4050_v31  ;;  %v1821_v34 = vpop.f32.mrf.mxu3 }
 0x2af   : > { %v1822_v36 = vadd.f32 %v1821_v34, %v1733_v29  ;;  %v2045_v41 = vmax.f32 %v1965_v30, 0.0 }
 0x2b1   : > { %v2072_v12 = vmax.f32 %v1822_v36, 0.0 }
 0x2b2   : > { %v1877_v26 = vpop.f32.mrf.mxu0 }
 0x2b3   : > { %v1878_v6 = vadd.f32 %v1877_v26, %v4158_v19  ;;  %v1966_v32 = vpop.f32.mrf.mxu1 }
 0x2b4   : > { %v1734_v33 = vpop.f32.mrf.mxu2 }
 0x2b5   : > { %v1967_v28 = vadd.f32 %v1966_v32, %v1878_v6  ;;  %v1735_v58 = vadd.f32 %v1734_v33, %v4053_v13 }
 0x2b6   : > { %v1823_v21 = vpop.f32.mrf.mxu3 }
 0x2b7   : > { %v2047_v44 = vmax.f32 %v1967_v28, 0.0  ;;  %v1824_v38 = vadd.f32 %v1823_v21, %v1735_v58 }
 0x2b9   : > { %v2109_v60 = vpack.c.bf16 %v2047_v44, %v2045_v41  ;;  %v2074_v31 = vmax.f32 %v1824_v38, 0.0  ;;  %2280 = vmatmul.bf16.vlgmr.msra.gmra.mxu2 %v4073_v7 }
 0x2ba   : > { %v1880_v61 = vpop.f32.mrf.mxu0 }
 0x2bb   : > { %v1969_v11 = vpop.f32.mrf.mxu1  ;;  %2369 = vmatmul.bf16.vlgmr.msra.gmra.mxu3 %v2109_v60  ;;  %v4170_v37 = vpack.c.bf16 %v2074_v31, %v2072_v12  ;;  %v1881_v48 = vadd.f32 %v1880_v61, %v4158_v19 }
 0x2bc   : > { %v1737_v59 = vpop.f32.mrf.mxu2 }
 0x2bd   : > { %v1738_v45 = vadd.f32 %v1737_v59, %v4053_v13  ;;  %1919 = vmatmul.bf16.gmra.mxu0 %v3949_v46  ;;  %v1970_v40 = vadd.f32 %v1969_v11, %v1881_v48 }
 0x2be   : > { %2008 = vmatmul.bf16.gmra.mxu1 %v4071_v56  ;;  %v1826_v24 = vpop.f32.mrf.mxu3 }
 0x2bf   : > { %v1827_v20 = vadd.f32 %v1826_v24, %v1738_v45  ;;  %v2049_v0 = vmax.f32 %v1970_v40, 0.0 }
 0x2c1   : > { %v2076_v46 = vmax.f32 %v1827_v20, 0.0 }
 0x2c2   : > { %v1882_v52 = vpop.f32.mrf.mxu0 }
 0x2c3   : > { %v1883_v7 = vadd.f32 %v1882_v52, %v4158_v19  ;;  %v1971_v55 = vpop.f32.mrf.mxu1 }
 0x2c4   : > { %v1739_v43 = vpop.f32.mrf.mxu2 }
 0x2c5   : > { %v1972_v4 = vadd.f32 %v1971_v55, %v1883_v7  ;;  %v1740_v49 = vadd.f32 %v1739_v43, %v4053_v13 }
 0x2c6   : > { %v1828_v63 = vpop.f32.mrf.mxu3 }
 0x2c7   : > { %v2051_v2 = vmax.f32 %v1972_v4, 0.0  ;;  %v1829_v3 = vadd.f32 %v1828_v63, %v1740_v49 }
 0x2c9   : > { %v2078_v62 = vmax.f32 %v1829_v3, 0.0  ;;  %2285 = vmatmul.bf16.gmra.mxu2 %v4089_v22  ;;  %v2111_v56 = vpack.c.bf16 %v2051_v2, %v2049_v0 }
 0x2ca   : > { %v1885_v16 = vpop.f32.mrf.mxu0 }
 0x2cb   : > { %v1974_v15 = vpop.f32.mrf.mxu1  ;;  %2374 = vmatmul.bf16.gmra.mxu3 %v2111_v56  ;;  %v4179_v17 = vpack.c.bf16 %v2078_v62, %v2076_v46  ;;  %v1886_v23 = vadd.f32 %v1885_v16, %v4158_v19 }
 0x2cc   : > { %v1742_v53 = vpop.f32.mrf.mxu2 }
 0x2cd   : > { %v1743_v29 = vadd.f32 %v1742_v53, %v4053_v13  ;;  %1924 = vmatmul.bf16.gmra.mxu0 %v3964_v42  ;;  %v1975_v30 = vadd.f32 %v1974_v15, %v1886_v23 }
 0x2ce   : > { %2013 = vmatmul.bf16.gmra.mxu1 %v4083_v1  ;;  %v1831_v34 = vpop.f32.mrf.mxu3 }
 0x2cf   : > { %v1832_v36 = vadd.f32 %v1831_v34, %v1743_v29  ;;  %v2053_v21 = vmax.f32 %v1975_v30, 0.0 }
 0x2d1   : > { %v2080_v42 = vmax.f32 %v1832_v36, 0.0 }
 0x2d2   : > { %v1887_v26 = vpop.f32.mrf.mxu0 }
 0x2d3   : > { %v1888_v22 = vadd.f32 %v1887_v26, %v4158_v19  ;;  %v1976_v6 = vpop.f32.mrf.mxu1 }
 0x2d4   : > { %v1744_v32 = vpop.f32.mrf.mxu2 }
 0x2d5   : > { %v1977_v33 = vadd.f32 %v1976_v6, %v1888_v22  ;;  %v1745_v28 = vadd.f32 %v1744_v32, %v4053_v13 }
 0x2d6   : > { %v1833_v58 = vpop.f32.mrf.mxu3 }
 0x2d7   : > { %v2055_v41 = vmax.f32 %v1977_v33, 0.0  ;;  %v1834_v44 = vadd.f32 %v1833_v58, %v1745_v28 }
 0x2d9   : > { %v2082_v38 = vmax.f32 %v1834_v44, 0.0  ;;  %2290 = vmatmul.bf16.gmra.mxu2 %v4104_v10  ;;  %v2113_v1 = vpack.c.bf16 %v2055_v41, %v2053_v21 }
 0x2da   : > { %v1890_v12 = vpop.f32.mrf.mxu0 }
 0x2db   : > { %v1979_v60 = vpop.f32.mrf.mxu1  ;;  %2379 = vmatmul.bf16.gmra.mxu3 %v2113_v1  ;;  %v4188_v31 = vpack.c.bf16 %v2082_v38, %v2080_v42  ;;  %v1891_v45 = vadd.f32 %v1890_v12, %v4158_v19 }
 0x2dc   : > { %v1747_v61 = vpop.f32.mrf.mxu2 }
 0x2dd   : > { %v1748_v11 = vadd.f32 %v1747_v61, %v4053_v13  ;;  %1929 = vmatmul.bf16.gmra.mxu0 %v3991_v35  ;;  %v1980_v20 = vadd.f32 %v1979_v60, %v1891_v45 }
 0x2de   : > { %2018 = vmatmul.bf16.gmra.mxu1 %v4101_v8  ;;  %v1836_v59 = vpop.f32.mrf.mxu3 }
 0x2df   : > { %v1837_v24 = vadd.f32 %v1836_v59, %v1748_v11  ;;  %v2057_v4 = vmax.f32 %v1980_v20, 0.0 }
 0x2e1   : > { %v2084_v35 = vmax.f32 %v1837_v24, 0.0 }
 0x2e2   : > { %v1892_v48 = vpop.f32.mrf.mxu0 }
 0x2e3   : > { %v1893_v10 = vadd.f32 %v1892_v48, %v4158_v19  ;;  %v1981_v52 = vpop.f32.mrf.mxu1 }
 0x2e4   : > { %v1749_v40 = vpop.f32.mrf.mxu2 }
 0x2e5   : > { %v1982_v7 = vadd.f32 %v1981_v52, %v1893_v10  ;;  %v1750_v55 = vadd.f32 %v1749_v40, %v4053_v13 }
 0x2e6   : > { %v1838_v43 = vpop.f32.mrf.mxu3 }
 0x2e7   : > { %v2059_v49 = vmax.f32 %v1982_v7, 0.0  ;;  %v1839_v63 = vadd.f32 %v1838_v43, %v1750_v55 }
 0x2e9   : > { %v2086_v0 = vmax.f32 %v1839_v63, 0.0  ;;  %2295 = vmatmul.bf16.gmra.mxu2 %v4119_v50  ;;  %v2115_v8 = vpack.c.bf16 %v2059_v49, %v2057_v4 }
 0x2ea   : > { %v1895_v2 = vpop.f32.mrf.mxu0 }
 0x2eb   : > { %v1984_v3 = vpop.f32.mrf.mxu1  ;;  %2384 = vmatmul.bf16.gmra.mxu3 %v2115_v8  ;;  %v4197_v46 = vpack.c.bf16 %v2086_v0, %v2084_v35  ;;  %v1896_v15 = vadd.f32 %v1895_v2, %v4158_v19 }
 0x2ec   : > { %v1752_v62 = vpop.f32.mrf.mxu2 }
 0x2ed   : > { %v1753_v56 = vadd.f32 %v1752_v62, %v4053_v13  ;;  %1934 = vmatmul.bf16.gmra.mxu0 %v4006_v57  ;;  %v1985_v34 = vadd.f32 %v1984_v3, %v1896_v15 }
 0x2ee   : > { %2023 = vmatmul.bf16.gmra.mxu1 %v4113_v5  ;;  %v1841_v16 = vpop.f32.mrf.mxu3 }
 0x2ef   : > { %v1842_v53 = vadd.f32 %v1841_v16, %v1753_v56  ;;  %v2061_v6 = vmax.f32 %v1985_v34, 0.0 }
 0x2f1   : > { %v2088_v57 = vmax.f32 %v1842_v53, 0.0 }
 0x2f2   : > { %v1897_v29 = vpop.f32.mrf.mxu0 }
 0x2f3   : > { %v1898_v50 = vadd.f32 %v1897_v29, %v4158_v19  ;;  %v1986_v23 = vpop.f32.mrf.mxu1 }
 0x2f4   : > { %v1754_v36 = vpop.f32.mrf.mxu2 }
 0x2f5   : > { %v1987_v26 = vadd.f32 %v1986_v23, %v1898_v50  ;;  %v1755_v30 = vadd.f32 %v1754_v36, %v4053_v13 }
 0x2f6   : > { %v1843_v22 = vpop.f32.mrf.mxu3 }
 0x2f7   : > { %v2063_v32 = vmax.f32 %v1987_v26, 0.0  ;;  %v1844_v33 = vadd.f32 %v1843_v22, %v1755_v30 }
 0x2f9   : > { %v2117_v28 = vpack.c.bf16 %v2063_v32, %v2061_v6  ;;  %v2090_v5 = vmax.f32 %v1844_v33, 0.0  ;;  %2300 = vmatmul.bf16.gmra.mxu2 %v4134_v18 }
 0x2fa   : > { %v1900_v58 = vpop.f32.mrf.mxu0 }
 0x2fb   : > { %v1989_v21 = vpop.f32.mrf.mxu1  ;;  %2389 = vmatmul.bf16.gmra.mxu3 %v2117_v28  ;;  %v4206_v41 = vpack.c.bf16 %v2090_v5, %v2088_v57  ;;  %v1901_v1 = vadd.f32 %v1900_v58, %v4158_v19 }
 0x2fc   : > { %v1757_v44 = vpop.f32.mrf.mxu2 }
 0x2fd   : > { %v1758_v42 = vadd.f32 %v1757_v44, %v4053_v13  ;;  %1939 = vmatmul.bf16.gmra.mxu0 %v4021_v25  ;;  %v1990_v61 = vadd.f32 %v1989_v21, %v1901_v1 }
 0x2fe   : > { %2028 = vmatmul.bf16.gmra.mxu1 %v4131_v47  ;;  %v1846_v38 = vpop.f32.mrf.mxu3 }
 0x2ff   : > { %v1847_v12 = vadd.f32 %v1846_v38, %v1758_v42  ;;  %v2065_v20 = vmax.f32 %v1990_v61, 0.0 }
 0x301   : > { %v2092_v25 = vmax.f32 %v1847_v12, 0.0 }
 0x302   : > { %v1902_v60 = vpop.f32.mrf.mxu0 }
 0x303   : > { %v1903_v18 = vadd.f32 %v1902_v60, %v4158_v19  ;;  %v1991_v11 = vpop.f32.mrf.mxu1 }
 0x304   : > { %v1759_v59 = vpop.f32.mrf.mxu2 }
 0x305   : > { %v1992_v45 = vadd.f32 %v1991_v11, %v1903_v18  ;;  %v1760_v24 = vadd.f32 %v1759_v59, %v4053_v13 }
 0x306   : > { %v1848_v48 = vpop.f32.mrf.mxu3 }
 0x307   : > { %v2067_v10 = vmax.f32 %v1992_v45, 0.0  ;;  %v1849_v52 = vadd.f32 %v1848_v48, %v1760_v24 }
 0x309   : > { %v2119_v40 = vpack.c.bf16 %v2067_v10, %v2065_v20  ;;  %v2094_v47 = vmax.f32 %v1849_v52, 0.0  ;;  %2305 = vmatmul.bf16.gmra.mxu2 %v4146_v51 }
 0x30a   : > { %v1905_v7 = vpop.f32.mrf.mxu0 }
 0x30b   : > { %v1994_v55 = vpop.f32.mrf.mxu1  ;;  %2394 = vmatmul.bf16.gmra.mxu3 %v2119_v40  ;;  %v4215_v43 = vpack.c.bf16 %v2094_v47, %v2092_v25  ;;  %v1906_v35 = vadd.f32 %v1905_v7, %v4158_v19 }
 0x30c   : > { %v1762_v4 = vpop.f32.mrf.mxu2 }
 0x30d   : > { %v1763_v49 = vadd.f32 %v1762_v4, %v4053_v13  ;;  %1944 = vmatmul.bf16.gmra.mxu0 %v4036_v9  ;;  %v1995_v2 = vadd.f32 %v1994_v55, %v1906_v35 }
 0x30e   : > { %2033 = vmatmul.bf16.gmra.mxu1 %v4143_v39  ;;  %v1851_v63 = vpop.f32.mrf.mxu3 }
 0x30f   : > { %v1852_v0 = vadd.f32 %v1851_v63, %v1763_v49  ;;  %v2069_v53 = vmax.f32 %v1995_v2, 0.0  ;;  %v4243_v2 = vld [vmem:[%s4349_s8] ss:$0 sm:$0xff] }
 0x311   : > { %v2096_v9 = vmax.f32 %v1852_v0, 0.0 }
 0x312   : > { %v1907_v8 = vpop.f32.mrf.mxu0 }
 0x313   : > { %v1908_v51 = vadd.f32 %v1907_v8, %v4158_v19  ;;  %v1996_v3 = vpop.f32.mrf.mxu1 }
 0x314   : > { %v1764_v62 = vpop.f32.mrf.mxu2 }
 0x315   : > { %v1997_v56 = vadd.f32 %v1996_v3, %v1908_v51  ;;  %v1765_v16 = vadd.f32 %v1764_v62, %v4053_v13 }
 0x316   : > { %v1853_v15 = vpop.f32.mrf.mxu3 }
 0x317   : > { %v2071_v29 = vmax.f32 %v1997_v56, 0.0  ;;  %v1854_v34 = vadd.f32 %v1853_v15, %v1765_v16 }
 0x319   : > { %v2121_v50 = vpack.c.bf16 %v2071_v29, %v2069_v53  ;;  %v2098_v39 = vmax.f32 %v1854_v34, 0.0  ;;  %2310 = vmatmul.bf16.gmra.mxu2 %v4161_v14 }
 0x31a   : > { %v1910_v23 = vpop.f32.mrf.mxu0 }
 0x31b   : > { %v1999_v36 = vpop.f32.mrf.mxu1  ;;  %2399 = vmatmul.bf16.gmra.mxu3 %v2121_v50  ;;  %v4224_v26 = vpack.c.bf16 %v2098_v39, %v2096_v9  ;;  %v1911_v32 = vadd.f32 %v1910_v23, %v4158_v19 }
 0x31c   : > { %v1767_v30 = vpop.f32.mrf.mxu2 }
 0x31d   : > { %v1768_v22 = vadd.f32 %v1767_v30, %v4053_v13  ;;  %1949 = vmatmul.bf16.gmra.mxu0 %v4059_v27  ;;  %v2000_v28 = vadd.f32 %v1999_v36, %v1911_v32 }
 0x31e   : > { %2038 = vmatmul.bf16.gmra.mxu1 %v4155_v54  ;;  %v1856_v6 = vpop.f32.mrf.mxu3 }
 0x31f   : > { %v1857_v33 = vadd.f32 %v1856_v6, %v1768_v22  ;;  %v2073_v38 = vmax.f32 %v2000_v28, 0.0 }
 0x321   : > { %v2100_v27 = vmax.f32 %v1857_v33, 0.0 }
 0x322   : > { %v1912_v57 = vpop.f32.mrf.mxu0 }
 0x323   : > { %v1913_v14 = vadd.f32 %v1912_v57, %v4158_v19  ;;  %v2001_v5 = vpop.f32.mrf.mxu1 }
 0x324   : > { %v1769_v58 = vpop.f32.mrf.mxu2 }
 0x325   : > { %v2002_v21 = vadd.f32 %v2001_v5, %v1913_v14  ;;  %v1770_v44 = vadd.f32 %v1769_v58, %v4053_v13 }
 0x326   : > { %v1858_v42 = vpop.f32.mrf.mxu3 }
 0x327   : > { %v2075_v1 = vmax.f32 %v2002_v21, 0.0  ;;  %v1859_v12 = vadd.f32 %v1858_v42, %v1770_v44 }
 0x329   : > { %v2123_v60 = vpack.c.bf16 %v2075_v1, %v2073_v38  ;;  %v2102_v54 = vmax.f32 %v1859_v12, 0.0  ;;  %2315 = vmatmul.bf16.gmra.mxu2 %v4170_v37 }
 0x32a   : > { %v1915_v61 = vpop.f32.mrf.mxu0 }
 0x32b   : > { %v2004_v18 = vpop.f32.mrf.mxu1  ;;  %2404 = vmatmul.bf16.gmra.mxu3 %v2123_v60  ;;  %v4233_v11 = vpack.c.bf16 %v2102_v54, %v2100_v27  ;;  %v1916_v48 = vadd.f32 %v1915_v61, %v4158_v19 }
 0x32c   : > { %v1772_v59 = vpop.f32.mrf.mxu2 }
 0x32d   : > { %v1773_v45 = vadd.f32 %v1772_v59, %v4053_v13  ;;  %v2005_v52 = vadd.f32 %v2004_v18, %v1916_v48 }
 0x32e   : > { %v1861_v24 = vpop.f32.mrf.mxu3 }
 0x32f   : > { %v1862_v20 = vadd.f32 %v1861_v24, %v1773_v45  ;;  %v2077_v4 = vmax.f32 %v2005_v52, 0.0 }
 0x331   : > { %v2104_v35 = vmax.f32 %v1862_v20, 0.0 }
 0x332   : > { %v1917_v10 = vpop.f32.mrf.mxu0 }
 0x333   : > { %v1918_v25 = vadd.f32 %v1917_v10, %v4158_v19  ;;  %v2006_v40 = vpop.f32.mrf.mxu1 }
 0x334   : > { %v1774_v47 = vpop.f32.mrf.mxu2 }
 0x335   : > { %v2007_v37 = vadd.f32 %v2006_v40, %v1918_v25  ;;  %v1775_v7 = vadd.f32 %v1774_v47, %v4053_v13 }
 0x336   : > { %v1863_v55 = vpop.f32.mrf.mxu3 }
 0x337   : > { %v2079_v49 = vmax.f32 %v2007_v37, 0.0  ;;  %v1864_v63 = vadd.f32 %v1863_v55, %v1775_v7 }
 0x339   : > { %v2125_v0 = vpack.c.bf16 %v2079_v49, %v2077_v4  ;;  %v2106_v8 = vmax.f32 %v1864_v63, 0.0  ;;  %2320 = vmatmul.bf16.gmra.mxu2 %v4179_v17 }
 0x33a   : > { %v1920_v51 = vpop.f32.mrf.mxu0 }
 0x33b   : > { %v2009_v3 = vpop.f32.mrf.mxu1  ;;  %2409 = vmatmul.bf16.gmra.mxu3 %v2125_v0  ;;  %v4246_v62 = vpack.c.bf16 %v2106_v8, %v2104_v35  ;;  %v1921_v16 = vadd.f32 %v1920_v51, %v4158_v19 }
 0x33c   : > { %v2281_v13 = vpop.f32.mrf.mxu2 }
 0x33d   : > { %v2282_v56 = vadd.f32 %v4243_v2, %v2281_v13  ;;  %v2010_v29 = vadd.f32 %v2009_v3, %v1921_v16 }
 0x33e   : > { %v2370_v17 = vpop.f32.mrf.mxu3 }
 0x33f   : > { %v2371_v15 = vadd.f32 %v2370_v17, %v2282_v56  ;;  %v2081_v30 = vmax.f32 %v2010_v29, 0.0 }
 0x341   : > { %2450 = vst [vmem:[%s4252_s25] sm:$0xff] %v2371_v15 }
 0x342   : > { %v1922_v53 = vpop.f32.mrf.mxu0 }
 0x343   : > { %v1923_v34 = vadd.f32 %v1922_v53, %v4158_v19  ;;  %v2011_v9 = vpop.f32.mrf.mxu1 }
 0x344   : > { %v2283_v50 = vpop.f32.mrf.mxu2 }
 0x345   : > { %v2012_v39 = vadd.f32 %v2011_v9, %v1923_v34  ;;  %v2284_v23 = vadd.f32 %v4243_v2, %v2283_v50 }
 0x346   : > { %v2372_v36 = vpop.f32.mrf.mxu3 }
 0x347   : > { %v2083_v22 = vmax.f32 %v2012_v39, 0.0  ;;  %v2373_v6 = vadd.f32 %v2372_v36, %v2284_v23 }
 0x349   : > { %v2127_v32 = vpack.c.bf16 %v2083_v22, %v2081_v30  ;;  %2451 = vst [vmem:[%s4252_s25 + $0x8] sm:$0xff] %v2373_v6  ;;  %2325 = vmatmul.bf16.gmra.mxu2 %v4188_v31 }
 0x34a   : > { %v1925_v33 = vpop.f32.mrf.mxu0 }
 0x34b   : > { %v2014_v57 = vpop.f32.mrf.mxu1  ;;  %2414 = vmatmul.bf16.gmra.mxu3 %v2127_v32  ;;  %v1926_v58 = vadd.f32 %v1925_v33, %v4158_v19 }
 0x34c   : > { %v2286_v28 = vpop.f32.mrf.mxu2 }
 0x34d   : > { %v2287_v14 = vadd.f32 %v4243_v2, %v2286_v28  ;;  %v2015_v42 = vadd.f32 %v2014_v57, %v1926_v58 }
 0x34e   : > { %v2375_v5 = vpop.f32.mrf.mxu3 }
 0x34f   : > { %v2376_v21 = vadd.f32 %v2375_v5, %v2287_v14  ;;  %v2085_v54 = vmax.f32 %v2015_v42, 0.0 }
 0x351   : > { %2452 = vst [vmem:[%s4252_s25 + $0x10] sm:$0xff] %v2376_v21 }
 0x352   : > { %v1927_v44 = vpop.f32.mrf.mxu0 }
 0x353   : > { %v1928_v38 = vadd.f32 %v1927_v44, %v4158_v19  ;;  %v2016_v1 = vpop.f32.mrf.mxu1 }
 0x354   : > { %v2288_v12 = vpop.f32.mrf.mxu2 }
 0x355   : > { %v2017_v27 = vadd.f32 %v2016_v1, %v1928_v38  ;;  %v2289_v31 = vadd.f32 %v4243_v2, %v2288_v12 }
 0x356   : > { %v2377_v60 = vpop.f32.mrf.mxu3 }
 0x357   : > { %v2087_v61 = vmax.f32 %v2017_v27, 0.0  ;;  %v2378_v18 = vadd.f32 %v2377_v60, %v2289_v31 }
 0x359   : > { %v2129_v59 = vpack.c.bf16 %v2087_v61, %v2085_v54  ;;  %2453 = vst [vmem:[%s4252_s25 + $0x18] sm:$0xff] %v2378_v18  ;;  %2330 = vmatmul.bf16.gmra.mxu2 %v4197_v46 }
 0x35a   : > { %v1930_v45 = vpop.f32.mrf.mxu0 }
 0x35b   : > { %v2019_v24 = vpop.f32.mrf.mxu1  ;;  %2419 = vmatmul.bf16.gmra.mxu3 %v2129_v59  ;;  %v1931_v52 = vadd.f32 %v1930_v45, %v4158_v19 }
 0x35c   : > { %v2291_v48 = vpop.f32.mrf.mxu2 }
 0x35d   : > { %v2292_v20 = vadd.f32 %v4243_v2, %v2291_v48  ;;  %v2020_v47 = vadd.f32 %v2019_v24, %v1931_v52 }
 0x35e   : > { %v2380_v10 = vpop.f32.mrf.mxu3 }
 0x35f   : > { %v2381_v25 = vadd.f32 %v2380_v10, %v2292_v20  ;;  %v2089_v63 = vmax.f32 %v2020_v47, 0.0 }
 0x361   : > { %2454 = vst [vmem:[%s4252_s25 + $0x20] sm:$0xff] %v2381_v25 }
 0x362   : > { %v1932_v40 = vpop.f32.mrf.mxu0 }
 0x363   : > { %v1933_v37 = vadd.f32 %v1932_v40, %v4158_v19  ;;  %v2021_v7 = vpop.f32.mrf.mxu1 }
 0x364   : > { %v2293_v55 = vpop.f32.mrf.mxu2 }
 0x365   : > { %v2022_v4 = vadd.f32 %v2021_v7, %v1933_v37  ;;  %v2294_v46 = vadd.f32 %v4243_v2, %v2293_v55 }
 0x366   : > { %v2382_v49 = vpop.f32.mrf.mxu3 }
 0x367   : > { %v2091_v35 = vmax.f32 %v2022_v4, 0.0  ;;  %v2383_v0 = vadd.f32 %v2382_v49, %v2294_v46 }
 0x369   : > { %v2131_v8 = vpack.c.bf16 %v2091_v35, %v2089_v63  ;;  %2455 = vst [vmem:[%s4252_s25 + $0x28] sm:$0xff] %v2383_v0  ;;  %2335 = vmatmul.bf16.gmra.mxu2 %v4206_v41 }
 0x36a   : > { %v1935_v51 = vpop.f32.mrf.mxu0 }
 0x36b   : > { %v2024_v3 = vpop.f32.mrf.mxu1  ;;  %2424 = vmatmul.bf16.gmra.mxu3 %v2131_v8  ;;  %v1936_v16 = vadd.f32 %v1935_v51, %v4158_v19 }
 0x36c   : > { %v2296_v13 = vpop.f32.mrf.mxu2 }
 0x36d   : > { %v2297_v56 = vadd.f32 %v4243_v2, %v2296_v13  ;;  %v2025_v29 = vadd.f32 %v2024_v3, %v1936_v16 }
 0x36e   : > { %v2385_v17 = vpop.f32.mrf.mxu3 }
 0x36f   : > { %v2386_v15 = vadd.f32 %v2385_v17, %v2297_v56  ;;  %v2093_v36 = vmax.f32 %v2025_v29, 0.0 }
 0x371   : > { %2456 = vst [vmem:[%s4252_s25 + $0x30] sm:$0xff] %v2386_v15 }
 0x372   : > { %v1937_v53 = vpop.f32.mrf.mxu0 }
 0x373   : > { %v1938_v34 = vadd.f32 %v1937_v53, %v4158_v19  ;;  %v2026_v9 = vpop.f32.mrf.mxu1 }
 0x374   : > { %v2298_v50 = vpop.f32.mrf.mxu2 }
 0x375   : > { %v2027_v39 = vadd.f32 %v2026_v9, %v1938_v34  ;;  %v2299_v41 = vadd.f32 %v4243_v2, %v2298_v50 }
 0x376   : > { %v2387_v23 = vpop.f32.mrf.mxu3 }
 0x377   : > { %v2095_v30 = vmax.f32 %v2027_v39, 0.0  ;;  %v2388_v22 = vadd.f32 %v2387_v23, %v2299_v41 }
 0x379   : > { %v2133_v6 = vpack.c.bf16 %v2095_v30, %v2093_v36  ;;  %2457 = vst [vmem:[%s4252_s25 + $0x38] sm:$0xff] %v2388_v22  ;;  %2340 = vmatmul.bf16.gmra.mxu2 %v4215_v43 }
 0x37a   : > { %v1940_v32 = vpop.f32.mrf.mxu0 }
 0x37b   : > { %v2029_v33 = vpop.f32.mrf.mxu1  ;;  %2429 = vmatmul.bf16.gmra.mxu3 %v2133_v6  ;;  %v1941_v5 = vadd.f32 %v1940_v32, %v4158_v19 }
 0x37c   : > { %v2301_v57 = vpop.f32.mrf.mxu2 }
 0x37d   : > { %v2302_v28 = vadd.f32 %v4243_v2, %v2301_v57  ;;  %v2030_v44 = vadd.f32 %v2029_v33, %v1941_v5 }
 0x37e   : > { %v2390_v14 = vpop.f32.mrf.mxu3 }
 0x37f   : > { %v2391_v58 = vadd.f32 %v2390_v14, %v2302_v28  ;;  %v2097_v31 = vmax.f32 %v2030_v44, 0.0 }
 0x381   : > { %2458 = vst [vmem:[%s4252_s25 + $0x40] sm:$0xff] %v2391_v58 }
 0x382   : > { %v1942_v21 = vpop.f32.mrf.mxu0 }
 0x383   : > { %v1943_v42 = vadd.f32 %v1942_v21, %v4158_v19  ;;  %v2031_v38 = vpop.f32.mrf.mxu1 }
 0x384   : > { %v2303_v1 = vpop.f32.mrf.mxu2 }
 0x385   : > { %v2032_v12 = vadd.f32 %v2031_v38, %v1943_v42  ;;  %v2304_v43 = vadd.f32 %v4243_v2, %v2303_v1 }
 0x386   : > { %v2392_v27 = vpop.f32.mrf.mxu3 }
 0x387   : > { %v2099_v60 = vmax.f32 %v2032_v12, 0.0  ;;  %v2393_v54 = vadd.f32 %v2392_v27, %v2304_v43 }
 0x389   : > { %v2135_v61 = vpack.c.bf16 %v2099_v60, %v2097_v31  ;;  %2459 = vst [vmem:[%s4252_s25 + $0x48] sm:$0xff] %v2393_v54  ;;  %2345 = vmatmul.bf16.gmra.mxu2 %v4224_v26 }
 0x38a   : > { %v1945_v18 = vpop.f32.mrf.mxu0 }
 0x38b   : > { %v2034_v59 = vpop.f32.mrf.mxu1  ;;  %2434 = vmatmul.bf16.gmra.mxu3 %v2135_v61  ;;  %v1946_v20 = vadd.f32 %v1945_v18, %v4158_v19 }
 0x38c   : > { %v2306_v45 = vpop.f32.mrf.mxu2 }
 0x38d   : > { %v2307_v24 = vadd.f32 %v4243_v2, %v2306_v45  ;;  %v2035_v25 = vadd.f32 %v2034_v59, %v1946_v20 }
 0x38e   : > { %v2395_v48 = vpop.f32.mrf.mxu3 }
 0x38f   : > { %v2396_v10 = vadd.f32 %v2395_v48, %v2307_v24  ;;  %v2101_v4 = vmax.f32 %v2035_v25, 0.0 }
 0x391   : > { %2460 = vst [vmem:[%s4252_s25 + $0x50] sm:$0xff] %v2396_v10 }
 0x392   : > { %v1947_v52 = vpop.f32.mrf.mxu0 }
 0x393   : > { %v1948_v40 = vadd.f32 %v1947_v52, %v4158_v19  ;;  %v2036_v47 = vpop.f32.mrf.mxu1 }
 0x394   : > { %v2308_v37 = vpop.f32.mrf.mxu2 }
 0x395   : > { %v2037_v7 = vadd.f32 %v2036_v47, %v1948_v40  ;;  %v2309_v26 = vadd.f32 %v4243_v2, %v2308_v37 }
 0x396   : > { %v2397_v55 = vpop.f32.mrf.mxu3 }
 0x397   : > { %v2103_v46 = vmax.f32 %v2037_v7, 0.0  ;;  %v2398_v49 = vadd.f32 %v2397_v55, %v2309_v26 }
 0x399   : > { %v2137_v63 = vpack.c.bf16 %v2103_v46, %v2101_v4  ;;  %2461 = vst [vmem:[%s4252_s25 + $0x58] sm:$0xff] %v2398_v49  ;;  %2350 = vmatmul.bf16.gmra.mxu2 %v4233_v11 }
 0x39a   : > { %v1950_v35 = vpop.f32.mrf.mxu0 }
 0x39b   : > { %v2039_v0 = vpop.f32.mrf.mxu1  ;;  %2439 = vmatmul.bf16.gmra.mxu3 %v2137_v63  ;;  %v1951_v13 = vadd.f32 %v1950_v35, %v4158_v19 }
 0x39c   : > { %v2311_v8 = vpop.f32.mrf.mxu2 }
 0x39d   : > { %v2312_v51 = vadd.f32 %v4243_v2, %v2311_v8  ;;  %v2040_v16 = vadd.f32 %v2039_v0, %v1951_v13 }
 0x39e   : > { %v2400_v3 = vpop.f32.mrf.mxu3 }
 0x39f   : > { %v2401_v56 = vadd.f32 %v2400_v3, %v2312_v51  ;;  %v2105_v50 = vmax.f32 %v2040_v16, 0.0 }
 0x3a1   : > { %2462 = vst [vmem:[%s4252_s25 + $0x60] sm:$0xff] %v2401_v56 }
 0x3a2   : > { %v1952_v17 = vpop.f32.mrf.mxu0 }
 0x3a3   : > { %v1953_v15 = vadd.f32 %v1952_v17, %v4158_v19  ;;  %v2041_v53 = vpop.f32.mrf.mxu1 }
 0x3a4   : > { %v2313_v29 = vpop.f32.mrf.mxu2 }
 0x3a5   : > { %v2042_v11 = vadd.f32 %v2041_v53, %v1953_v15  ;;  %v2314_v34 = vadd.f32 %v4243_v2, %v2313_v29 }
 0x3a6   : > { %v2402_v9 = vpop.f32.mrf.mxu3 }
 0x3a7   : > { %v2107_v39 = vmax.f32 %v2042_v11, 0.0  ;;  %v2403_v41 = vadd.f32 %v2402_v9, %v2314_v34 }
 0x3a9   : > { %v2139_v23 = vpack.c.bf16 %v2107_v39, %v2105_v50  ;;  %2463 = vst [vmem:[%s4252_s25 + $0x68] sm:$0xff] %v2403_v41  ;;  %2355 = vmatmul.bf16.gmra.mxu2 %v4246_v62 }
 0x3ab   : > { %2444 = vmatmul.bf16.gmra.mxu3 %v2139_v23 }
 0x3ac   : > { %v2316_v36 = vpop.f32.mrf.mxu2 }
 0x3ad   : > { %v2317_v19 = vadd.f32 %v4243_v2, %v2316_v36 }
 0x3ae   : > { %v2405_v30 = vpop.f32.mrf.mxu3 }
 0x3af   : > { %v2406_v22 = vadd.f32 %v2405_v30, %v2317_v19 }
 0x3b1   : > { %2464 = vst [vmem:[%s4252_s25 + $0x70] sm:$0xff] %v2406_v22 }
 0x3b4   : > { %v2318_v6 = vpop.f32.mrf.mxu2 }
 0x3b5   : > { %v2319_v32 = vadd.f32 %v4243_v2, %v2318_v6 }
 0x3b6   : > { %v2407_v33 = vpop.f32.mrf.mxu3 }
 0x3b7   : > { %v2408_v57 = vadd.f32 %v2407_v33, %v2319_v32 }
 0x3b9   : > { %2465 = vst [vmem:[%s4252_s25 + $0x78] sm:$0xff] %v2408_v57 }
 0x3bc   : > { %v2321_v28 = vpop.f32.mrf.mxu2 }
 0x3bd   : > { %v2322_v14 = vadd.f32 %v4243_v2, %v2321_v28 }
 0x3be   : > { %v2410_v62 = vpop.f32.mrf.mxu3 }
 0x3bf   : > { %v2411_v5 = vadd.f32 %v2410_v62, %v2322_v14 }
 0x3c1   : > { %2466 = vst [vmem:[%s4252_s25 + $0x80] sm:$0xff] %v2411_v5 }
 0x3c4   : > { %v2323_v58 = vpop.f32.mrf.mxu2 }
 0x3c5   : > { %v2324_v21 = vadd.f32 %v4243_v2, %v2323_v58 }
 0x3c6   : > { %v2412_v44 = vpop.f32.mrf.mxu3 }
 0x3c7   : > { %v2413_v42 = vadd.f32 %v2412_v44, %v2324_v21 }
 0x3c9   : > { %2467 = vst [vmem:[%s4252_s25 + $0x88] sm:$0xff] %v2413_v42 }
 0x3cc   : > { %v2326_v38 = vpop.f32.mrf.mxu2 }
 0x3cd   : > { %v2327_v1 = vadd.f32 %v4243_v2, %v2326_v38 }
 0x3ce   : > { %v2415_v12 = vpop.f32.mrf.mxu3 }
 0x3cf   : > { %v2416_v43 = vadd.f32 %v2415_v12, %v2327_v1 }
 0x3d1   : > { %2468 = vst [vmem:[%s4252_s25 + $0x90] sm:$0xff] %v2416_v43 }
 0x3d4   : > { %v2328_v27 = vpop.f32.mrf.mxu2 }
 0x3d5   : > { %v2329_v31 = vadd.f32 %v4243_v2, %v2328_v27 }
 0x3d6   : > { %v2417_v60 = vpop.f32.mrf.mxu3 }
 0x3d7   : > { %v2418_v54 = vadd.f32 %v2417_v60, %v2329_v31 }
 0x3d9   : > { %2469 = vst [vmem:[%s4252_s25 + $0x98] sm:$0xff] %v2418_v54 }
 0x3dc   : > { %v2331_v61 = vpop.f32.mrf.mxu2 }
 0x3dd   : > { %v2332_v18 = vadd.f32 %v4243_v2, %v2331_v61 }
 0x3de   : > { %v2420_v59 = vpop.f32.mrf.mxu3 }
 0x3df   : > { %v2421_v45 = vadd.f32 %v2420_v59, %v2332_v18 }
 0x3e1   : > { %2470 = vst [vmem:[%s4252_s25 + $0xa0] sm:$0xff] %v2421_v45 }
 0x3e4   : > { %v2333_v24 = vpop.f32.mrf.mxu2 }
 0x3e5   : > { %v2334_v48 = vadd.f32 %v4243_v2, %v2333_v24 }
 0x3e6   : > { %v2422_v20 = vpop.f32.mrf.mxu3 }
 0x3e7   : > { %v2423_v10 = vadd.f32 %v2422_v20, %v2334_v48 }
 0x3e9   : > { %2471 = vst [vmem:[%s4252_s25 + $0xa8] sm:$0xff] %v2423_v10 }
 0x3ec   : > { %v2336_v52 = vpop.f32.mrf.mxu2 }
 0x3ed   : > { %v2337_v25 = vadd.f32 %v4243_v2, %v2336_v52 }
 0x3ee   : > { %v2425_v40 = vpop.f32.mrf.mxu3 }
 0x3ef   : > { %v2426_v47 = vadd.f32 %v2425_v40, %v2337_v25 }
 0x3f1   : > { %2472 = vst [vmem:[%s4252_s25 + $0xb0] sm:$0xff] %v2426_v47 }
 0x3f4   : > { %v2338_v37 = vpop.f32.mrf.mxu2 }
 0x3f5   : > { %v2339_v7 = vadd.f32 %v4243_v2, %v2338_v37 }
 0x3f6   : > { %v2427_v26 = vpop.f32.mrf.mxu3 }
 0x3f7   : > { %v2428_v55 = vadd.f32 %v2427_v26, %v2339_v7 }
 0x3f9   : > { %2473 = vst [vmem:[%s4252_s25 + $0xb8] sm:$0xff] %v2428_v55 }
 0x3fc   : > { %v2341_v4 = vpop.f32.mrf.mxu2 }
 0x3fd   : > { %v2342_v46 = vadd.f32 %v4243_v2, %v2341_v4 }
 0x3fe   : > { %v2430_v49 = vpop.f32.mrf.mxu3 }
 0x3ff   : > { %v2431_v63 = vadd.f32 %v2430_v49, %v2342_v46 }
 0x401   : > { %2474 = vst [vmem:[%s4252_s25 + $0xc0] sm:$0xff] %v2431_v63 }
 0x404   : > { %v2343_v35 = vpop.f32.mrf.mxu2 }
 0x405   : > { %v2344_v0 = vadd.f32 %v4243_v2, %v2343_v35 }
 0x406   : > { %v2432_v8 = vpop.f32.mrf.mxu3 }
 0x407   : > { %v2433_v51 = vadd.f32 %v2432_v8, %v2344_v0 }
 0x409   : > { %2475 = vst [vmem:[%s4252_s25 + $0xc8] sm:$0xff] %v2433_v51 }
 0x40c   : > { %v2346_v3 = vpop.f32.mrf.mxu2 }
 0x40d   : > { %v2347_v13 = vadd.f32 %v4243_v2, %v2346_v3 }
 0x40e   : > { %v2435_v56 = vpop.f32.mrf.mxu3 }
 0x40f   : > { %v2436_v17 = vadd.f32 %v2435_v56, %v2347_v13 }
 0x411   : > { %2476 = vst [vmem:[%s4252_s25 + $0xd0] sm:$0xff] %v2436_v17 }
 0x414   : > { %v2348_v16 = vpop.f32.mrf.mxu2 }
 0x415   : > { %v2349_v15 = vadd.f32 %v4243_v2, %v2348_v16 }
 0x416   : > { %v2437_v53 = vpop.f32.mrf.mxu3 }
 0x417   : > { %v2438_v29 = vadd.f32 %v2437_v53, %v2349_v15 }
 0x419   : > { %2477 = vst [vmem:[%s4252_s25 + $0xd8] sm:$0xff] %v2438_v29 }
 0x41c   : > { %v2351_v11 = vpop.f32.mrf.mxu2 }
 0x41d   : > { %v2352_v34 = vadd.f32 %v4243_v2, %v2351_v11 }
 0x41e   : > { %v2440_v9 = vpop.f32.mrf.mxu3 }
 0x41f   : > { %v2441_v50 = vadd.f32 %v2440_v9, %v2352_v34 }
 0x421   : > { %2478 = vst [vmem:[%s4252_s25 + $0xe0] sm:$0xff] %v2441_v50 }
 0x424   : > { %v2353_v39 = vpop.f32.mrf.mxu2 }
 0x425   : > { %v2354_v41 = vadd.f32 %v4243_v2, %v2353_v39 }
 0x426   : > { %v2442_v23 = vpop.f32.mrf.mxu3 }
 0x427   : > { %v2443_v36 = vadd.f32 %v2442_v23, %v2354_v41 }
 0x429   : > { %2479 = vst [vmem:[%s4252_s25 + $0xe8] sm:$0xff] %v2443_v36 }
 0x42c   : > { %v2356_v19 = vpop.f32.mrf.mxu2 }
 0x42d   : > { %v2357_v30 = vadd.f32 %v4243_v2, %v2356_v19 }
 0x42e   : > { %v2445_v22 = vpop.f32.mrf.mxu3 }
 0x42f   : > { %v2446_v6 = vadd.f32 %v2445_v22, %v2357_v30 }
 0x431   : > { %2480 = vst [vmem:[%s4252_s25 + $0xf0] sm:$0xff] %v2446_v6 }
 0x434   : > { %v2358_v32 = vpop.f32.mrf.mxu2 }
 0x435   : > { %v2359_v33 = vadd.f32 %v4243_v2, %v2358_v32 }
 0x436   : > { %v2447_v57 = vpop.f32.mrf.mxu3 }
 0x437   : > { %v2448_v28 = vadd.f32 %v2447_v57, %v2359_v33 }
 0x439   : > { %2481 = vst [vmem:[%s4252_s25 + $0xf8] sm:$0xff] %v2448_v28 }
 0x43a PF: > { %s19_s30 = sadd.s32 1, %s3124_s30  }
 0x43b   : > { %p16_p4 = scmp.ge.s32.totalorder %s19_s30, 4  }
 0x43d   :  { %18 = sbr.rel (!%p16_p4) target bundleno = 1 (0x1), region = 86 }

</bundles_post_ra>
